<compile_context>
chip_gen: v7x
topology: tpu7x:2x2x1
jax: 0.10.0
libtpu: 0.0.40
codegen_flags: <defaults>
</compile_context>

<pallas_src>
import functools

import jax
import jax.numpy as jnp
from jax.experimental import pallas as pl
from jax.experimental.pallas import tpu as pltpu


def _divisor_tile(n, cap):
    """Largest tile <= cap that evenly divides n (keeps BlockSpec grids exact)."""
    cap = max(1, min(cap, n))
    for t in range(cap, 0, -1):
        if n % t == 0:
            return t
    return 1


_VMEM_LIMIT = 32 * 1024 * 1024  # safe on v5e/v6e/v7x; above v5e's 16 MiB scoped default.


# --------------------------------------------------------------------------------------
# Kernel G: FiLM gamma = tanh(lang @ Wl + bl), computed once (hoisted out of row tiles).
# --------------------------------------------------------------------------------------
def _film_gamma_kernel(l_ref, wl_ref, bl_ref, g_ref):
    g_ref[...] = jnp.tanh(
        jnp.dot(l_ref[...], wl_ref[...], preferred_element_type=jnp.float32) + bl_ref[...]
    )


def film_gamma(lang, wl, bl):
    L = lang.shape[0]
    h = wl.shape[-1]
    l2 = lang.reshape(1, L).astype(jnp.float32)
    bl2 = bl.reshape(1, h).astype(jnp.float32)
    wl2 = wl.astype(jnp.float32)
    return pl.pallas_call(
        _film_gamma_kernel,
        out_shape=jax.ShapeDtypeStruct((1, h), jnp.float32),
        grid=(1,),
        in_specs=[pl.BlockSpec((1, L), lambda i: (0, 0)),
                  pl.BlockSpec((L, h), lambda i: (0, 0)),
                  pl.BlockSpec((1, h), lambda i: (0, 0))],
        out_specs=pl.BlockSpec((1, h), lambda i: (0, 0)),
        compiler_params=pltpu.CompilerParams(dimension_semantics=("arbitrary",)),
    )(l2, wl2, bl2)


# --------------------------------------------------------------------------------------
# Kernel A: fused conv1 for BOTH streams (single matmul, K = 9*Cin, Cout = 2*hidden)
#           + stream-one ReLU (lateral features) + stream-two FiLM + lateral add + ReLU.
#           Row-tiled grid; the padded image stays resident in VMEM (no HBM im2col).
# --------------------------------------------------------------------------------------
def _conv1_film_kernel(x_ref, w1_ref, b1_ref, g_ref, o_ref, *, tile_h, wp, cin, hidden):
    t = pl.program_id(0)
    row0 = pl.multiple_of(t * tile_h, tile_h)

    # Build im2col patches in-kernel from the VMEM-resident padded image.
    pieces = []
    for dy in range(3):
        rows = x_ref[pl.ds(row0 + dy, tile_h), :, :]          # (T, Wp+2, Cin) bf16
        for dx in range(3):
            pieces.append(rows[:, dx:dx + wp, :])             # (T, Wp, Cin)
    patches = jnp.concatenate(pieces, axis=-1)                # (T, Wp, 9*Cin)
    patches = patches.reshape(tile_h * wp, 9 * cin)           # leading-dim collapse

    # One MXU matmul for both streams' conv1 (bf16 in, f32 accumulation).
    acc = jnp.dot(patches, w1_ref[...], preferred_element_type=jnp.float32)
    acc = acc.reshape(tile_h, wp, 2 * hidden) + b1_ref[...]

    lat = jnp.maximum(acc[:, :, :hidden], 0.0)                # stream one -> lateral feats
    f2 = acc[:, :, hidden:]                                   # stream two pre-activation
    f2 = jnp.maximum(f2 * (1.0 + g_ref[...]) + lat, 0.0)      # FiLM gamma + lateral add

    o_ref[:, :, :hidden] = lat.astype(o_ref.dtype)
    o_ref[:, :, hidden:] = f2.astype(o_ref.dtype)


def conv1_film_fused(xpad, w1, b1, gamma3, hp, wp, hidden, tile_h):
    cin = xpad.shape[-1]
    kernel = functools.partial(_conv1_film_kernel, tile_h=tile_h, wp=wp,
                               cin=cin, hidden=hidden)
    return pl.pallas_call(
        kernel,
        out_shape=jax.ShapeDtypeStruct((hp, wp, 2 * hidden), jnp.bfloat16),
        grid=(hp // tile_h,),
        in_specs=[
            pl.BlockSpec(xpad.shape, lambda t: (0, 0, 0)),    # padded image, VMEM-resident
            pl.BlockSpec(w1.shape, lambda t: (0, 0)),
            pl.BlockSpec(b1.shape, lambda t: (0, 0, 0)),
            pl.BlockSpec(gamma3.shape, lambda t: (0, 0, 0)),
        ],
        out_specs=pl.BlockSpec((tile_h, wp, 2 * hidden), lambda t: (t, 0, 0)),
        compiler_params=pltpu.CompilerParams(
            dimension_semantics=("parallel",),                # shards row tiles on v7x
            vmem_limit_bytes=_VMEM_LIMIT),
    )(xpad, w1, b1, gamma3)


# --------------------------------------------------------------------------------------
# Kernel B: fused head = conv2_s1(lat) + conv2_s2(f2) (== one 3x3 conv over the
#           concatenated channels, FusionAdd folded into the weights), crop folded into
#           the index math, logits written lane-dense as (H, W) into a resident output,
#           global softmax applied in the last grid step.
# --------------------------------------------------------------------------------------
def _head_fuse_kernel(f_ref, w2_ref, b_ref, o_ref, *, tile_h, width, pad_h, pad_w,
                      apply_softmax):
    t = pl.program_id(0)
    r0 = pl.multiple_of(t * tile_h, tile_h)
    two_h = w2_ref.shape[-1]

    acc3 = jnp.zeros((tile_h, width, two_h), jnp.float32)
    for dy in range(3):
        rows = f_ref[pl.ds(pad_h + r0 + dy, tile_h), :, :]    # (T, Wp+2, 2h) bf16
        for dx in range(3):
            sl = rows[:, pad_w + dx: pad_w + dx + width, :].astype(jnp.float32)
            w = w2_ref[3 * dy + dx: 3 * dy + dx + 1, :].reshape(1, 1, two_h)
            acc3 = acc3 + sl * w
    logits = jnp.sum(acc3, axis=-1) + b_ref[0, 0]             # (T, W), W on lanes

    o_ref[pl.ds(r0, tile_h), :] = logits

    if apply_softmax:
        @pl.when(t == pl.num_programs(0) - 1)
        def _():
            full = o_ref[...]
            m = jnp.max(full)
            e = jnp.exp(full - m)
            o_ref[...] = e / jnp.sum(e)


def head_fuse_softmax(fpad, w2, b2, h, w, pad_h, pad_w, tile_h, *, apply_softmax):
    kernel = functools.partial(_head_fuse_kernel, tile_h=tile_h, width=w,
                               pad_h=pad_h, pad_w=pad_w, apply_softmax=apply_softmax)
    return pl.pallas_call(
        kernel,
        out_shape=jax.ShapeDtypeStruct((h, w), jnp.float32),
        grid=(h // tile_h,),
        in_specs=[
            pl.BlockSpec(fpad.shape, lambda t: (0, 0, 0)),    # features, VMEM-resident
            pl.BlockSpec(w2.shape, lambda t: (0, 0)),
            pl.BlockSpec(b2.shape, lambda t: (0, 0)),
        ],
        out_specs=pl.BlockSpec((h, w), lambda t: (0, 0)),     # resident across the grid
        compiler_params=pltpu.CompilerParams(
            dimension_semantics=("arbitrary",),               # softmax needs sequential
            vmem_limit_bytes=_VMEM_LIMIT),
    )(fpad, w2, b2)


# --------------------------------------------------------------------------------------
# Module: parameters + forward pass mirroring TwoStreamAttentionLangFusionLat.forward.
# --------------------------------------------------------------------------------------
def init_params(key, in_c, hidden, lang_dim):
    ks = jax.random.split(key, 5)
    scale = 0.1
    return {
        # stream one (ResNet45_10s stand-in): conv-relu-conv; hidden feature is the lateral
        "s1_conv1_w": scale * jax.random.normal(ks[0], (3, 3, in_c, hidden), jnp.float32),
        "s1_conv1_b": jnp.zeros((hidden,), jnp.float32),
        "s1_conv2_w": scale * jax.random.normal(ks[1], (3, 3, hidden, 1), jnp.float32),
        "s1_conv2_b": jnp.zeros((1,), jnp.float32),
        # stream two (CLIPLingUNetLat stand-in): conv, language FiLM + lateral add, conv
        "s2_conv1_w": scale * jax.random.normal(ks[2], (3, 3, in_c, hidden), jnp.float32),
        "s2_conv1_b": jnp.zeros((hidden,), jnp.float32),
        "s2_lang_w": scale * jax.random.normal(ks[3], (lang_dim, hidden), jnp.float32),
        "s2_lang_b": jnp.zeros((hidden,), jnp.float32),
        "s2_conv2_w": scale * jax.random.normal(ks[4], (3, 3, hidden, 1), jnp.float32),
        "s2_conv2_b": jnp.zeros((1,), jnp.float32),
    }


def two_stream_attention_forward(params, inp_img, lang_goal, n_rotations=1, softmax=True,
                                 row_tile_cap=64):
    """inp_img: (H, W, C) float32; lang_goal: (lang_dim,) precomputed language embedding."""
    assert n_rotations == 1  # rotation == identity (see TODO at top)
    H, W, C = inp_img.shape
    max_dim = max(H, W)
    pad_h = (max_dim - H) // 2                                # floor, both sides (as torch)
    pad_w = (max_dim - W) // 2
    Hp, Wp = H + 2 * pad_h, W + 2 * pad_w
    hidden = params["s1_conv1_w"].shape[-1]

    # Square padding + 3x3 conv halo in ONE pad; bf16 halves the activation DMA bytes.
    xpad = jnp.pad(inp_img, ((pad_h + 1, pad_h + 1), (pad_w + 1, pad_w + 1), (0, 0)))
    xpad = xpad.astype(jnp.bfloat16)

    # Language FiLM modulation (hoisted, computed once).
    gamma = film_gamma(lang_goal, params["s2_lang_w"], params["s2_lang_b"])  # (1, hidden)

    # Fused conv1 weights: both streams read the same image patches -> Cout = 2*hidden.
    w1 = jnp.concatenate([params["s1_conv1_w"], params["s2_conv1_w"]], axis=-1)
    w1 = w1.reshape(9 * C, 2 * hidden).astype(jnp.bfloat16)
    b1 = jnp.concatenate([params["s1_conv1_b"], params["s2_conv1_b"]]).reshape(1, 1, 2 * hidden)

    tile_a = _divisor_tile(Hp, row_tile_cap)
    feat = conv1_film_fused(xpad, w1, b1, gamma.reshape(1, 1, hidden),
                            Hp, Wp, hidden, tile_a)           # (Hp, Wp, 2h) bf16 [lat | f2]

    # Conv halo for the head conv (the crop itself is folded into kernel B's indexing).
    fpad = jnp.pad(feat, ((1, 1), (1, 1), (0, 0)))

    # Fused head weights: x1 + x2 == one conv over concatenated channels (FusionAdd).
    w2 = jnp.concatenate([params["s1_conv2_w"], params["s2_conv2_w"]], axis=2)  # (3,3,2h,1)
    w2 = w2.reshape(9, 2 * hidden).astype(jnp.float32)
    b2 = (params["s1_conv2_b"] + params["s2_conv2_b"]).reshape(1, 1).astype(jnp.float32)

    tile_b = _divisor_tile(H, row_tile_cap)
    out = head_fuse_softmax(fpad, w2, b2, H, W, pad_h, pad_w, tile_b,
                            apply_softmax=softmax)            # (H, W) f32

    if softmax:
        return out.reshape(H, W, n_rotations)                 # logits.shape[1:]
    return out.reshape(1, H * W * n_rotations)                # (1, prod(logits.shape))


if __name__ == "__main__":
    key = jax.random.PRNGKey(0)
    H, W, C = 16, 12, 4          # non-square to exercise the pad-to-square / crop path
    hidden, lang_dim = 8, 32
    k_img, k_lang, k_par = jax.random.split(key, 3)

    inp_img = jax.random.normal(k_img, (H, W, C), jnp.float32)
    lang_goal = jax.random.normal(k_lang, (lang_dim,), jnp.float32)
    params = init_params(k_par, C, hidden, lang_dim)

    fwd = jax.jit(two_stream_attention_forward,
                  static_argnames=("n_rotations", "softmax", "row_tile_cap"))
    # row_tile_cap=8 -> multi-step grids even at this toy size (exercises the tiled path);
    # at CLIPort resolutions the default (64-row tiles) is used.
    out = fwd(params, inp_img, lang_goal, n_rotations=1, softmax=True, row_tile_cap=8)
    out = jax.block_until_ready(out)

    assert out.shape == (H, W, 1), out.shape
    assert abs(float(jnp.sum(out)) - 1.0) < 1e-3, float(jnp.sum(out))
    print("KERNEL_OK")
</pallas_src>

<mosaic_0001>
module attributes {stable_mosaic.version = 11 : i64} {
  func.func @_film_gamma_kernel(%arg0: i32, %arg1: memref<1x32xf32, #tpu.memory_space<vmem>>, %arg2: memref<32x8xf32, #tpu.memory_space<vmem>>, %arg3: memref<1x8xf32, #tpu.memory_space<vmem>>, %arg4: memref<1x8xf32, #tpu.memory_space<vmem>>) attributes {dimension_semantics = [#tpu.dimension_semantics<arbitrary>], iteration_bounds = array<i64: 1>, scalar_prefetch = 0 : i64, scratch_operands = 0 : i64, tpu.core_type = #tpu.core_type<tc>, window_params = [{pipeline_mode = #tpu.pipeline_mode<synchronous>, transform_indices = @transform_0, window_bounds = array<i64: 1, 32>}, {pipeline_mode = #tpu.pipeline_mode<synchronous>, transform_indices = @transform_1, window_bounds = array<i64: 32, 8>}, {pipeline_mode = #tpu.pipeline_mode<synchronous>, transform_indices = @transform_2, window_bounds = array<i64: 1, 8>}, {pipeline_mode = #tpu.pipeline_mode<synchronous>, transform_indices = @transform_3, window_bounds = array<i64: 1, 8>}]} {
    %c0 = arith.constant 0 : index
    %c0_0 = arith.constant 0 : index
    %0 = vector.load %arg1[%c0, %c0_0] : memref<1x32xf32, #tpu.memory_space<vmem>>, vector<1x32xf32>
    %c0_1 = arith.constant 0 : index
    %c0_2 = arith.constant 0 : index
    %1 = vector.load %arg2[%c0_1, %c0_2] : memref<32x8xf32, #tpu.memory_space<vmem>>, vector<32x8xf32>
    %cst = arith.constant dense<0.000000e+00> : vector<1x8xf32>
    %2 = tpu.matmul %0, %1, %cst {dimension_numbers = #tpu.dot_dimension_numbers<[1], [0], [0], [1], [0, 0, 1, 1], [], []>} : vector<1x32xf32>, vector<32x8xf32>, vector<1x8xf32> -> vector<1x8xf32>
    %c0_3 = arith.constant 0 : index
    %c0_4 = arith.constant 0 : index
    %3 = vector.load %arg3[%c0_3, %c0_4] : memref<1x8xf32, #tpu.memory_space<vmem>>, vector<1x8xf32>
    %4 = arith.addf %2, %3 : vector<1x8xf32>
    %5 = math.tanh %4 : vector<1x8xf32>
    %c0_5 = arith.constant 0 : index
    %c0_6 = arith.constant 0 : index
    %6 = vector.load %arg4[%c0_5, %c0_6] : memref<1x8xf32, #tpu.memory_space<vmem>>, vector<1x8xf32>
    tpu.vector_store %arg4[%c0_5, %c0_6], %5 {strides = array<i32>} : memref<1x8xf32, #tpu.memory_space<vmem>>, vector<1x8xf32>,
    return
  }
  func.func @transform_0(%arg0: i32) -> (i32, i32) {
    %c0_i32 = arith.constant 0 : i32
    %c0_i32_0 = arith.constant 0 : i32
    %c0_i32_1 = arith.constant 0 : i32
    return %c0_i32, %c0_i32_0 : i32, i32
  }
  func.func @transform_1(%arg0: i32) -> (i32, i32) {
    %c0_i32 = arith.constant 0 : i32
    %c0_i32_0 = arith.constant 0 : i32
    %c0_i32_1 = arith.constant 0 : i32
    return %c0_i32, %c0_i32_0 : i32, i32
  }
  func.func @transform_2(%arg0: i32) -> (i32, i32) {
    %c0_i32 = arith.constant 0 : i32
    %c0_i32_0 = arith.constant 0 : i32
    %c0_i32_1 = arith.constant 0 : i32
    return %c0_i32, %c0_i32_0 : i32, i32
  }
  func.func @transform_3(%arg0: i32) -> (i32, i32) {
    %c0_i32 = arith.constant 0 : i32
    %c0_i32_0 = arith.constant 0 : i32
    %c0_i32_1 = arith.constant 0 : i32
    return %c0_i32, %c0_i32_0 : i32, i32
  }
}

module attributes {stable_mosaic.version = 11 : i64} {
  func.func @_conv1_film_kernel(%arg0: i32, %arg1: memref<18x18x4xbf16, #tpu.memory_space<vmem>>, %arg2: memref<36x16xbf16, #tpu.memory_space<vmem>>, %arg3: memref<1x1x16xf32, #tpu.memory_space<vmem>>, %arg4: memref<1x1x8xf32, #tpu.memory_space<vmem>>, %arg5: memref<8x16x16xbf16, #tpu.memory_space<vmem>>) attributes {dimension_semantics = [#tpu.dimension_semantics<parallel>], iteration_bounds = array<i64: 2>, scalar_prefetch = 0 : i64, scratch_operands = 0 : i64, tpu.core_type = #tpu.core_type<tc>, window_params = [{pipeline_mode = #tpu.pipeline_mode<synchronous>, transform_indices = @transform_0, window_bounds = array<i64: 18, 18, 4>}, {pipeline_mode = #tpu.pipeline_mode<synchronous>, transform_indices = @transform_1, window_bounds = array<i64: 36, 16>}, {pipeline_mode = #tpu.pipeline_mode<synchronous>, transform_indices = @transform_2, window_bounds = array<i64: 1, 1, 16>}, {pipeline_mode = #tpu.pipeline_mode<synchronous>, transform_indices = @transform_3, window_bounds = array<i64: 1, 1, 8>}, {transform_indices = @transform_4, window_bounds = array<i64: 8, 16, 16>}]} {
    %c8_i32 = arith.constant 8 : i32
    %0 = arith.muli %arg0, %c8_i32 : i32
    %1 = tpu.assume_multiple %0, 8 : i32
    %c0_i32 = arith.constant 0 : i32
    %2 = arith.addi %1, %c0_i32 : i32
    %3 = arith.index_cast %2 : i32 to index
    %c0 = arith.constant 0 : index
    %c0_0 = arith.constant 0 : index
    %4 = vector.load %arg1[%3, %c0, %c0_0] : memref<18x18x4xbf16, #tpu.memory_space<vmem>>, vector<8x18x4xbf16>
    %5 = vector.extract_strided_slice %4 {offsets = [0, 0, 0], sizes = [8, 16, 4], strides = [1, 1, 1]} : vector<8x18x4xbf16> to vector<8x16x4xbf16>
    %6 = vector.extract_strided_slice %4 {offsets = [0, 1, 0], sizes = [8, 16, 4], strides = [1, 1, 1]} : vector<8x18x4xbf16> to vector<8x16x4xbf16>
    %7 = vector.extract_strided_slice %4 {offsets = [0, 2, 0], sizes = [8, 16, 4], strides = [1, 1, 1]} : vector<8x18x4xbf16> to vector<8x16x4xbf16>
    %c1_i32 = arith.constant 1 : i32
    %8 = arith.addi %1, %c1_i32 : i32
    %9 = arith.index_cast %8 : i32 to index
    %c0_1 = arith.constant 0 : index
    %c0_2 = arith.constant 0 : index
    %10 = vector.load %arg1[%9, %c0_1, %c0_2] : memref<18x18x4xbf16, #tpu.memory_space<vmem>>, vector<8x18x4xbf16>
    %11 = vector.extract_strided_slice %10 {offsets = [0, 0, 0], sizes = [8, 16, 4], strides = [1, 1, 1]} : vector<8x18x4xbf16> to vector<8x16x4xbf16>
    %12 = vector.extract_strided_slice %10 {offsets = [0, 1, 0], sizes = [8, 16, 4], strides = [1, 1, 1]} : vector<8x18x4xbf16> to vector<8x16x4xbf16>
    %13 = vector.extract_strided_slice %10 {offsets = [0, 2, 0], sizes = [8, 16, 4], strides = [1, 1, 1]} : vector<8x18x4xbf16> to vector<8x16x4xbf16>
    %c2_i32 = arith.constant 2 : i32
    %14 = arith.addi %1, %c2_i32 : i32
    %15 = arith.index_cast %14 : i32 to index
    %c0_3 = arith.constant 0 : index
    %c0_4 = arith.constant 0 : index
    %16 = vector.load %arg1[%15, %c0_3, %c0_4] : memref<18x18x4xbf16, #tpu.memory_space<vmem>>, vector<8x18x4xbf16>
    %17 = vector.extract_strided_slice %16 {offsets = [0, 0, 0], sizes = [8, 16, 4], strides = [1, 1, 1]} : vector<8x18x4xbf16> to vector<8x16x4xbf16>
    %18 = vector.extract_strided_slice %16 {offsets = [0, 1, 0], sizes = [8, 16, 4], strides = [1, 1, 1]} : vector<8x18x4xbf16> to vector<8x16x4xbf16>
    %19 = vector.extract_strided_slice %16 {offsets = [0, 2, 0], sizes = [8, 16, 4], strides = [1, 1, 1]} : vector<8x18x4xbf16> to vector<8x16x4xbf16>
    %20 = tpu.concatenate %5, %6, %7, %11, %12, %13, %17, %18, %19 in 2 : vector<8x16x4xbf16>, vector<8x16x4xbf16>, vector<8x16x4xbf16>, vector<8x16x4xbf16>, vector<8x16x4xbf16>, vector<8x16x4xbf16>, vector<8x16x4xbf16>, vector<8x16x4xbf16>, vector<8x16x4xbf16> -> vector<8x16x36xbf16>
    %21 = vector.shape_cast %20 : vector<8x16x36xbf16> to vector<128x36xbf16>
    %c0_5 = arith.constant 0 : index
    %c0_6 = arith.constant 0 : index
    %22 = vector.load %arg2[%c0_5, %c0_6] : memref<36x16xbf16, #tpu.memory_space<vmem>>, vector<36x16xbf16>
    %cst = arith.constant dense<0.000000e+00> : vector<128x16xf32>
    %23 = tpu.matmul %21, %22, %cst {dimension_numbers = #tpu.dot_dimension_numbers<[1], [0], [0], [1], [0, 0, 1, 1], [], []>} : vector<128x36xbf16>, vector<36x16xbf16>, vector<128x16xf32> -> vector<128x16xf32>
    %24 = vector.shape_cast %23 : vector<128x16xf32> to vector<8x16x16xf32>
    %c0_7 = arith.constant 0 : index
    %c0_8 = arith.constant 0 : index
    %c0_9 = arith.constant 0 : index
    %25 = vector.load %arg3[%c0_7, %c0_8, %c0_9] : memref<1x1x16xf32, #tpu.memory_space<vmem>>, vector<1x1x16xf32>
    %26 = vector.broadcast %25 : vector<1x1x16xf32> to vector<8x16x16xf32>
    %27 = arith.addf %24, %26 : vector<8x16x16xf32>
    %28 = vector.extract_strided_slice %27 {offsets = [0, 0, 0], sizes = [8, 16, 8], strides = [1, 1, 1]} : vector<8x16x16xf32> to vector<8x16x8xf32>
    %cst_10 = arith.constant 0.000000e+00 : f32
    %29 = vector.broadcast %cst_10 : f32 to vector<8x16x8xf32>
    %30 = arith.maximumf %28, %29 : vector<8x16x8xf32>
    %31 = vector.extract_strided_slice %27 {offsets = [0, 0, 8], sizes = [8, 16, 8], strides = [1, 1, 1]} : vector<8x16x16xf32> to vector<8x16x8xf32>
    %c0_11 = arith.constant 0 : index
    %c0_12 = arith.constant 0 : index
    %c0_13 = arith.constant 0 : index
    %32 = vector.load %arg4[%c0_11, %c0_12, %c0_13] : memref<1x1x8xf32, #tpu.memory_space<vmem>>, vector<1x1x8xf32>
    %cst_14 = arith.constant 1.000000e+00 : f32
    %33 = vector.broadcast %cst_14 : f32 to vector<1x1x8xf32>
    %34 = arith.addf %33, %32 : vector<1x1x8xf32>
    %35 = vector.broadcast %34 : vector<1x1x8xf32> to vector<8x16x8xf32>
    %36 = arith.mulf %31, %35 : vector<8x16x8xf32>
    %37 = arith.addf %36, %30 : vector<8x16x8xf32>
    %cst_15 = arith.constant 0.000000e+00 : f32
    %38 = vector.broadcast %cst_15 : f32 to vector<8x16x8xf32>
    %39 = arith.maximumf %37, %38 : vector<8x16x8xf32>
    %40 = arith.truncf %30 : vector<8x16x8xf32> to vector<8x16x8xbf16>
    %c0_16 = arith.constant 0 : index
    %c0_17 = arith.constant 0 : index
    %c0_18 = arith.constant 0 : index
    %41 = vector.load %arg5[%c0_16, %c0_17, %c0_18] : memref<8x16x16xbf16, #tpu.memory_space<vmem>>, vector<8x16x8xbf16>
    tpu.vector_store %arg5[%c0_16, %c0_17, %c0_18], %40 {strides = array<i32>} : memref<8x16x16xbf16, #tpu.memory_space<vmem>>, vector<8x16x8xbf16>,
    %42 = arith.truncf %39 : vector<8x16x8xf32> to vector<8x16x8xbf16>
    %c0_19 = arith.constant 0 : index
    %c0_20 = arith.constant 0 : index
    %c8 = arith.constant 8 : index
    %43 = vector.load %arg5[%c0_19, %c0_20, %c8] : memref<8x16x16xbf16, #tpu.memory_space<vmem>>, vector<8x16x8xbf16>
    tpu.vector_store %arg5[%c0_19, %c0_20, %c8], %42 {strides = array<i32>} : memref<8x16x16xbf16, #tpu.memory_space<vmem>>, vector<8x16x8xbf16>,
    return
  }
  func.func @transform_0(%arg0: i32) -> (i32, i32, i32) {
    %c0_i32 = arith.constant 0 : i32
    %c0_i32_0 = arith.constant 0 : i32
    %c0_i32_1 = arith.constant 0 : i32
    %c0_i32_2 = arith.constant 0 : i32
    return %c0_i32, %c0_i32_0, %c0_i32_1 : i32, i32, i32
  }
  func.func @transform_1(%arg0: i32) -> (i32, i32) {
    %c0_i32 = arith.constant 0 : i32
    %c0_i32_0 = arith.constant 0 : i32
    %c0_i32_1 = arith.constant 0 : i32
    return %c0_i32, %c0_i32_0 : i32, i32
  }
  func.func @transform_2(%arg0: i32) -> (i32, i32, i32) {
    %c0_i32 = arith.constant 0 : i32
    %c0_i32_0 = arith.constant 0 : i32
    %c0_i32_1 = arith.constant 0 : i32
    %c0_i32_2 = arith.constant 0 : i32
    return %c0_i32, %c0_i32_0, %c0_i32_1 : i32, i32, i32
  }
  func.func @transform_3(%arg0: i32) -> (i32, i32, i32) {
    %c0_i32 = arith.constant 0 : i32
    %c0_i32_0 = arith.constant 0 : i32
    %c0_i32_1 = arith.constant 0 : i32
    %c0_i32_2 = arith.constant 0 : i32
    return %c0_i32, %c0_i32_0, %c0_i32_1 : i32, i32, i32
  }
  func.func @transform_4(%arg0: i32) -> (i32, i32, i32) {
    %c0_i32 = arith.constant 0 : i32
    %c0_i32_0 = arith.constant 0 : i32
    %c0_i32_1 = arith.constant 0 : i32
    return %arg0, %c0_i32, %c0_i32_0 : i32, i32, i32
  }
}

module attributes {stable_mosaic.version = 11 : i64} {
  func.func @_head_fuse_kernel(%arg0: i32, %arg1: memref<18x18x16xbf16, #tpu.memory_space<vmem>>, %arg2: memref<9x16xf32, #tpu.memory_space<vmem>>, %arg3: memref<1x1xf32, #tpu.memory_space<vmem>>, %arg4: memref<16x12xf32, #tpu.memory_space<vmem>>) attributes {dimension_semantics = [#tpu.dimension_semantics<arbitrary>], iteration_bounds = array<i64: 2>, scalar_prefetch = 0 : i64, scratch_operands = 0 : i64, tpu.core_type = #tpu.core_type<tc>, window_params = [{pipeline_mode = #tpu.pipeline_mode<synchronous>, transform_indices = @transform_0, window_bounds = array<i64: 18, 18, 16>}, {pipeline_mode = #tpu.pipeline_mode<synchronous>, transform_indices = @transform_1, window_bounds = array<i64: 9, 16>}, {pipeline_mode = #tpu.pipeline_mode<synchronous>, transform_indices = @transform_2, window_bounds = array<i64: 1, 1>}, {pipeline_mode = #tpu.pipeline_mode<synchronous>, transform_indices = @transform_3, window_bounds = array<i64: 16, 12>}]} {
    %c8_i32 = arith.constant 8 : i32
    %0 = arith.muli %arg0, %c8_i32 : i32
    %1 = tpu.assume_multiple %0, 8 : i32
    %cst = arith.constant 0.000000e+00 : f32
    %2 = vector.broadcast %cst : f32 to vector<8x12x16xf32>
    %c0_i32 = arith.constant 0 : i32
    %3 = arith.addi %c0_i32, %1 : i32
    %c0_i32_0 = arith.constant 0 : i32
    %4 = arith.addi %3, %c0_i32_0 : i32
    %5 = arith.index_cast %4 : i32 to index
    %c0 = arith.constant 0 : index
    %c0_1 = arith.constant 0 : index
    %6 = vector.load %arg1[%5, %c0, %c0_1] : memref<18x18x16xbf16, #tpu.memory_space<vmem>>, vector<8x18x16xbf16>
    %7 = vector.extract_strided_slice %6 {offsets = [0, 2, 0], sizes = [8, 12, 16], strides = [1, 1, 1]} : vector<8x18x16xbf16> to vector<8x12x16xbf16>
    %8 = arith.extf %7 : vector<8x12x16xbf16> to vector<8x12x16xf32>
    %c0_2 = arith.constant 0 : index
    %c0_3 = arith.constant 0 : index
    %9 = vector.load %arg2[%c0_2, %c0_3] : memref<9x16xf32, #tpu.memory_space<vmem>>, vector<1x16xf32>
    %10 = vector.shape_cast %9 : vector<1x16xf32> to vector<1x1x16xf32>
    %11 = vector.broadcast %10 : vector<1x1x16xf32> to vector<8x12x16xf32>
    %12 = arith.mulf %8, %11 : vector<8x12x16xf32>
    %13 = arith.addf %2, %12 : vector<8x12x16xf32>
    %14 = vector.extract_strided_slice %6 {offsets = [0, 3, 0], sizes = [8, 12, 16], strides = [1, 1, 1]} : vector<8x18x16xbf16> to vector<8x12x16xbf16>
    %15 = arith.extf %14 : vector<8x12x16xbf16> to vector<8x12x16xf32>
    %c1 = arith.constant 1 : index
    %c0_4 = arith.constant 0 : index
    %16 = vector.load %arg2[%c1, %c0_4] : memref<9x16xf32, #tpu.memory_space<vmem>>, vector<1x16xf32>
    %17 = vector.shape_cast %16 : vector<1x16xf32> to vector<1x1x16xf32>
    %18 = vector.broadcast %17 : vector<1x1x16xf32> to vector<8x12x16xf32>
    %19 = arith.mulf %15, %18 : vector<8x12x16xf32>
    %20 = arith.addf %13, %19 : vector<8x12x16xf32>
    %21 = vector.extract_strided_slice %6 {offsets = [0, 4, 0], sizes = [8, 12, 16], strides = [1, 1, 1]} : vector<8x18x16xbf16> to vector<8x12x16xbf16>
    %22 = arith.extf %21 : vector<8x12x16xbf16> to vector<8x12x16xf32>
    %c2 = arith.constant 2 : index
    %c0_5 = arith.constant 0 : index
    %23 = vector.load %arg2[%c2, %c0_5] : memref<9x16xf32, #tpu.memory_space<vmem>>, vector<1x16xf32>
    %24 = vector.shape_cast %23 : vector<1x16xf32> to vector<1x1x16xf32>
    %25 = vector.broadcast %24 : vector<1x1x16xf32> to vector<8x12x16xf32>
    %26 = arith.mulf %22, %25 : vector<8x12x16xf32>
    %27 = arith.addf %20, %26 : vector<8x12x16xf32>
    %c0_i32_6 = arith.constant 0 : i32
    %28 = arith.addi %c0_i32_6, %1 : i32
    %c1_i32 = arith.constant 1 : i32
    %29 = arith.addi %28, %c1_i32 : i32
    %30 = arith.index_cast %29 : i32 to index
    %c0_7 = arith.constant 0 : index
    %c0_8 = arith.constant 0 : index
    %31 = vector.load %arg1[%30, %c0_7, %c0_8] : memref<18x18x16xbf16, #tpu.memory_space<vmem>>, vector<8x18x16xbf16>
    %32 = vector.extract_strided_slice %31 {offsets = [0, 2, 0], sizes = [8, 12, 16], strides = [1, 1, 1]} : vector<8x18x16xbf16> to vector<8x12x16xbf16>
    %33 = arith.extf %32 : vector<8x12x16xbf16> to vector<8x12x16xf32>
    %c3 = arith.constant 3 : index
    %c0_9 = arith.constant 0 : index
    %34 = vector.load %arg2[%c3, %c0_9] : memref<9x16xf32, #tpu.memory_space<vmem>>, vector<1x16xf32>
    %35 = vector.shape_cast %34 : vector<1x16xf32> to vector<1x1x16xf32>
    %36 = vector.broadcast %35 : vector<1x1x16xf32> to vector<8x12x16xf32>
    %37 = arith.mulf %33, %36 : vector<8x12x16xf32>
    %38 = arith.addf %27, %37 : vector<8x12x16xf32>
    %39 = vector.extract_strided_slice %31 {offsets = [0, 3, 0], sizes = [8, 12, 16], strides = [1, 1, 1]} : vector<8x18x16xbf16> to vector<8x12x16xbf16>
    %40 = arith.extf %39 : vector<8x12x16xbf16> to vector<8x12x16xf32>
    %c4 = arith.constant 4 : index
    %c0_10 = arith.constant 0 : index
    %41 = vector.load %arg2[%c4, %c0_10] : memref<9x16xf32, #tpu.memory_space<vmem>>, vector<1x16xf32>
    %42 = vector.shape_cast %41 : vector<1x16xf32> to vector<1x1x16xf32>
    %43 = vector.broadcast %42 : vector<1x1x16xf32> to vector<8x12x16xf32>
    %44 = arith.mulf %40, %43 : vector<8x12x16xf32>
    %45 = arith.addf %38, %44 : vector<8x12x16xf32>
    %46 = vector.extract_strided_slice %31 {offsets = [0, 4, 0], sizes = [8, 12, 16], strides = [1, 1, 1]} : vector<8x18x16xbf16> to vector<8x12x16xbf16>
    %47 = arith.extf %46 : vector<8x12x16xbf16> to vector<8x12x16xf32>
    %c5 = arith.constant 5 : index
    %c0_11 = arith.constant 0 : index
    %48 = vector.load %arg2[%c5, %c0_11] : memref<9x16xf32, #tpu.memory_space<vmem>>, vector<1x16xf32>
    %49 = vector.shape_cast %48 : vector<1x16xf32> to vector<1x1x16xf32>
    %50 = vector.broadcast %49 : vector<1x1x16xf32> to vector<8x12x16xf32>
    %51 = arith.mulf %47, %50 : vector<8x12x16xf32>
    %52 = arith.addf %45, %51 : vector<8x12x16xf32>
    %c0_i32_12 = arith.constant 0 : i32
    %53 = arith.addi %c0_i32_12, %1 : i32
    %c2_i32 = arith.constant 2 : i32
    %54 = arith.addi %53, %c2_i32 : i32
    %55 = arith.index_cast %54 : i32 to index
    %c0_13 = arith.constant 0 : index
    %c0_14 = arith.constant 0 : index
    %56 = vector.load %arg1[%55, %c0_13, %c0_14] : memref<18x18x16xbf16, #tpu.memory_space<vmem>>, vector<8x18x16xbf16>
    %57 = vector.extract_strided_slice %56 {offsets = [0, 2, 0], sizes = [8, 12, 16], strides = [1, 1, 1]} : vector<8x18x16xbf16> to vector<8x12x16xbf16>
    %58 = arith.extf %57 : vector<8x12x16xbf16> to vector<8x12x16xf32>
    %c6 = arith.constant 6 : index
    %c0_15 = arith.constant 0 : index
    %59 = vector.load %arg2[%c6, %c0_15] : memref<9x16xf32, #tpu.memory_space<vmem>>, vector<1x16xf32>
    %60 = vector.shape_cast %59 : vector<1x16xf32> to vector<1x1x16xf32>
    %61 = vector.broadcast %60 : vector<1x1x16xf32> to vector<8x12x16xf32>
    %62 = arith.mulf %58, %61 : vector<8x12x16xf32>
    %63 = arith.addf %52, %62 : vector<8x12x16xf32>
    %64 = vector.extract_strided_slice %56 {offsets = [0, 3, 0], sizes = [8, 12, 16], strides = [1, 1, 1]} : vector<8x18x16xbf16> to vector<8x12x16xbf16>
    %65 = arith.extf %64 : vector<8x12x16xbf16> to vector<8x12x16xf32>
    %c7 = arith.constant 7 : index
    %c0_16 = arith.constant 0 : index
    %66 = vector.load %arg2[%c7, %c0_16] : memref<9x16xf32, #tpu.memory_space<vmem>>, vector<1x16xf32>
    %67 = vector.shape_cast %66 : vector<1x16xf32> to vector<1x1x16xf32>
    %68 = vector.broadcast %67 : vector<1x1x16xf32> to vector<8x12x16xf32>
    %69 = arith.mulf %65, %68 : vector<8x12x16xf32>
    %70 = arith.addf %63, %69 : vector<8x12x16xf32>
    %71 = vector.extract_strided_slice %56 {offsets = [0, 4, 0], sizes = [8, 12, 16], strides = [1, 1, 1]} : vector<8x18x16xbf16> to vector<8x12x16xbf16>
    %72 = arith.extf %71 : vector<8x12x16xbf16> to vector<8x12x16xf32>
    %c8 = arith.constant 8 : index
    %c0_17 = arith.constant 0 : index
    %73 = vector.load %arg2[%c8, %c0_17] : memref<9x16xf32, #tpu.memory_space<vmem>>, vector<1x16xf32>
    %74 = vector.shape_cast %73 : vector<1x16xf32> to vector<1x1x16xf32>
    %75 = vector.broadcast %74 : vector<1x1x16xf32> to vector<8x12x16xf32>
    %76 = arith.mulf %72, %75 : vector<8x12x16xf32>
    %77 = arith.addf %70, %76 : vector<8x12x16xf32>
    %cst_18 = arith.constant dense<0.000000e+00> : vector<8x12xf32>
    %78 = vector.multi_reduction <add>, %77, %cst_18 [2] : vector<8x12x16xf32> to vector<8x12xf32>
    %c0_19 = arith.constant 0 : index
    %c0_20 = arith.constant 0 : index
    %79 = vector.load %arg3[%c0_19, %c0_20] : memref<1x1xf32, #tpu.memory_space<vmem>>, vector<1x1xf32>
    %80 = vector.extract %79[0, 0] : f32 from vector<1x1xf32>
    %81 = vector.broadcast %80 : f32 to vector<8x12xf32>
    %82 = arith.addf %78, %81 : vector<8x12xf32>
    %83 = arith.index_cast %1 : i32 to index
    %c0_21 = arith.constant 0 : index
    %84 = vector.load %arg4[%83, %c0_21] : memref<16x12xf32, #tpu.memory_space<vmem>>, vector<8x12xf32>
    tpu.vector_store %arg4[%83, %c0_21], %82 {strides = array<i32>} : memref<16x12xf32, #tpu.memory_space<vmem>>, vector<8x12xf32>,
    %c1_i32_22 = arith.constant 1 : i32
    %85 = arith.cmpi eq, %arg0, %c1_i32_22 : i32
    %86 = arith.extui %85 : i1 to i32
    %c0_i32_23 = arith.constant 0 : i32
    %87 = arith.cmpi ne, %86, %c0_i32_23 : i32
    scf.if %87 {
      %c0_24 = arith.constant 0 : index
      %c0_25 = arith.constant 0 : index
      %88 = vector.load %arg4[%c0_24, %c0_25] : memref<16x12xf32, #tpu.memory_space<vmem>>, vector<16x12xf32>
      %89 = vector.shape_cast %88 : vector<16x12xf32> to vector<1x16x12xf32>
      %cst_26 = arith.constant dense<0xFF800000> : vector<1xf32>
      %90 = vector.multi_reduction <maximumf>, %89, %cst_26 [1, 2] : vector<1x16x12xf32> to vector<1xf32>
      %91 = vector.shape_cast %90 : vector<1xf32> to vector<1x1x1xf32>
      %92 = vector.extract %91[0, 0, 0] : f32 from vector<1x1x1xf32>
      %93 = vector.broadcast %92 : f32 to vector<16x12xf32>
      %94 = arith.subf %88, %93 : vector<16x12xf32>
      %95 = math.exp %94 : vector<16x12xf32>
      %96 = vector.shape_cast %95 : vector<16x12xf32> to vector<1x16x12xf32>
      %cst_27 = arith.constant dense<0.000000e+00> : vector<1xf32>
      %97 = vector.multi_reduction <add>, %96, %cst_27 [1, 2] : vector<1x16x12xf32> to vector<1xf32>
      %98 = vector.shape_cast %97 : vector<1xf32> to vector<1x1x1xf32>
      %99 = vector.extract %98[0, 0, 0] : f32 from vector<1x1x1xf32>
      %100 = vector.broadcast %99 : f32 to vector<16x12xf32>
      %101 = arith.divf %95, %100 : vector<16x12xf32>
      %c0_28 = arith.constant 0 : index
      %c0_29 = arith.constant 0 : index
      %102 = vector.load %arg4[%c0_28, %c0_29] : memref<16x12xf32, #tpu.memory_space<vmem>>, vector<16x12xf32>
      tpu.vector_store %arg4[%c0_28, %c0_29], %101 {strides = array<i32>} : memref<16x12xf32, #tpu.memory_space<vmem>>, vector<16x12xf32>,
    } else {
    }
    return
  }
  func.func @transform_0(%arg0: i32) -> (i32, i32, i32) {
    %c0_i32 = arith.constant 0 : i32
    %c0_i32_0 = arith.constant 0 : i32
    %c0_i32_1 = arith.constant 0 : i32
    %c0_i32_2 = arith.constant 0 : i32
    return %c0_i32, %c0_i32_0, %c0_i32_1 : i32, i32, i32
  }
  func.func @transform_1(%arg0: i32) -> (i32, i32) {
    %c0_i32 = arith.constant 0 : i32
    %c0_i32_0 = arith.constant 0 : i32
    %c0_i32_1 = arith.constant 0 : i32
    return %c0_i32, %c0_i32_0 : i32, i32
  }
  func.func @transform_2(%arg0: i32) -> (i32, i32) {
    %c0_i32 = arith.constant 0 : i32
    %c0_i32_0 = arith.constant 0 : i32
    %c0_i32_1 = arith.constant 0 : i32
    return %c0_i32, %c0_i32_0 : i32, i32
  }
  func.func @transform_3(%arg0: i32) -> (i32, i32) {
    %c0_i32 = arith.constant 0 : i32
    %c0_i32_0 = arith.constant 0 : i32
    %c0_i32_1 = arith.constant 0 : i32
    return %c0_i32, %c0_i32_0 : i32, i32
  }
}

</mosaic_0001>

<bundles_post_ra>
// kernel: two_stream_attention_forward.3
= control target key start
LH: loop header
LB: loop body
LE: loop exit
PB: predicated region body
PF: predicated region fallthrough
CT: control target
= control target key end

     0   :  { %v129_v0 = vmov 0.0|0.0   ;;  %vm130_vm0 = vmmov 0   ;;  %v131_v4 = vmov 0.0   ;;  %vm20_vm1 = vcmask 261120   ;;  %s173_s1 = inlined_call_operand.vmem [shape: f32[32,8], index: 1, kind: input, shape index: {}]   ;;  %s174_s0 = inlined_call_operand.vmem [shape: f32[1,32], index: 0, kind: input, shape index: {}]   ;;  %s175_s2 = inlined_call_operand.vmem [shape: f32[1,8], index: 2, kind: input, shape index: {}]   ;;  %s176_s3 = inlined_call_operand.vmem [shape: f32[1,8], index: 3, kind: output, shape index: {}]  }
   0x1   :  { %118 = vmatprep.subr.bf16.mxu0 %v129_v0  ;;  %v15_v1 = vld [vmem:[%s173_s1] sm:$0xff]  ;;  %v16_v2 = vld [vmem:[%s173_s1 + $0x8] sm:$0xff]  ;;  %v17_v3 = vld [vmem:[%s173_s1 + $0x10] sm:$0xff]  ;;  %115 = vmatprep.mubr.msk.f32.mxu0 %vm130_vm0, %v131_v4  ;;  %vm95_vm2 = vcmask 57344  }
   0x2   :  { %v119_v5 = vpack.c.bf16 %v16_v2, %v15_v1  ;;  %v18_v6 = vld [vmem:[%s173_s1 + $0x18] sm:$0xff]  ;;  %v14_v8 = vld [vmem:[%s174_s0] sm:$0x1] }
   0x3   :  { %v122_v7 = vpack.c.bf16 %v18_v6, %v17_v3  ;;  %v19_v9 = vld [vmem:[%s175_s2] sm:$0x1] }
   0x4   :  { %120 = vmatpush3.bf16.msra.mxu0 %v119_v5 }
   0x5   :  { %121 = vmatprep.subr.bf16.mxu0 %v129_v0 }
   0x8   :  { %123 = vmatpush3.bf16.msra.mxu0 %v122_v7 }
   0xb   :  { %116 = vmatmul.mubr.msk.f32.vlgmr.msra.gmra.mrb[0].mxu0 %vm20_vm1, %v14_v8 }
  0xde   :  { %v90_v10 = vpop.f32.mrb[0].mxu0 }
  0xdf   :  { %v91_v11 = vadd.f32 %v90_v10, %v19_v9  ;;  %v117_v12 = vpop.f32.mrb[1].mxu0 }
  0xe1   :  { %127 = vtanh.f32 %v91_v11 }
  0xeb   :  { %v128_v13 = vpop.eup %127 }
  0xec   :  { %96 = vst.msk [vmem:[%s176_s3] sm:$0x1] %vm95_vm2, %v128_v13 }

// kernel: two_stream_attention_forward.4
= control target key start
LH: loop header
LB: loop body
LE: loop exit
PB: predicated region body
PF: predicated region fallthrough
CT: control target
= control target key end

     0   :  { %s1940_s15 = smov 0   ;;  %s2557_s0 = inlined_call_operand.vmem [shape: bf16[18,18,4], index: 0, kind: input, shape index: {}]   ;;  %s2558_s1 = inlined_call_operand.vmem [shape: bf16[36,16], index: 1, kind: input, shape index: {}]   ;;  %s2559_s2 = inlined_call_operand.vmem [shape: f32[1,1,16], index: 2, kind: input, shape index: {}]   ;;  %s2560_s3 = inlined_call_operand.vmem [shape: f32[1,1,8], index: 3, kind: input, shape index: {}]   ;;  %s2561_s4 = inlined_call_operand.vmem [shape: bf16[16,16,16], index: 4, kind: output, shape index: {}]  }
   0x1 LB: > { %s1601_s16 = sadd.s32 4294967295, %s1905_s15   ;;  %p1604_p0 = scmp.ge.s32.totalorder %s1905_s15, 1  ;;  %s1905_s15 = sphi %s1940_s15, %s14_s15  }
   0x2   : > { %p152_p1 = scmp.lt.s32.totalorder %s1905_s15, 3 }
   0x4   : > { %p153_p2 = pnand %p1604_p0, %p152_p1 }
   0x5   : > { %s1758_s17 = smul.u32 (!%p153_p2), 96, %s1601_s16  ;;  %vm443_vm0 = vcmask (!%p153_p2), 1046528   ;;  %vm330_vm1 = vsmask.f32 (!%p153_p2), 7424  ;;  %s1907_s21 = smov (!%p153_p2), 8   ;;  %vm1121_vm2 = vcmask (!%p153_p2), 1041408  }
   0x6   : > { %156 = sbr.rel (%p153_p2) target bundleno = 605 (0x25d), region = 36  ;;  %s1908_s22 = smov (!%p153_p2), 4   ;;  %vm948_vm3 = vcmask (!%p153_p2), 31744   ;;  %vm965_vm4 = vcmask (!%p153_p2), 64512   ;;  %vm982_vm5 = vcmask (!%p153_p2), 97280   ;;  %vm999_vm6 = vcmask (!%p153_p2), 130048  }
   0x7   : > { %s1953_s20 = scalar_lea.vmem (!%p153_p2), %s2557_s0, %s1758_s17  ;;  %s1909_s23 = smov (!%p153_p2), 12   ;;  %vm1016_vm7 = vcmask (!%p153_p2), 162816   ;;  %vm1033_vm8 = vcmask (!%p153_p2), 195584   ;;  %vm1050_vm9 = vcmask (!%p153_p2), 228352   ;;  %vm1067_vm10 = vcmask (!%p153_p2), 261120  }
   0x8   : > { %v1956_v0 = vld [vmem:[%s1953_s20 + $0x30] sm:$0xff] (!%p153_p2)   ;;  %v1849_v1 = vld [vmem:[%s1953_s20 + $0x38] ss:$0 sps:$4 sm:$0x11] (!%p153_p2)   ;;  %v1960_v2 = vld [vmem:[%s1953_s20] sm:$0xff] (!%p153_p2)   ;;  %s1910_s24 = smov (!%p153_p2), 16  }
   0x9   : > { %v456_v3 = vrot.slane (!%p153_p2), %v1956_v0, 1  ;;  %v457_v4 = vrot.slane (!%p153_p2), %v1849_v1, 1  ;;  %v1851_v5 = vld [vmem:[%s1953_s20 + $0x8] ss:$0 sps:$4 sm:$0x11] (!%p153_p2)   ;;  %v1965_v6 = vld [vmem:[%s1953_s20 + $0x3c] sm:$0xff] (!%p153_p2)  }
   0xa   : > { %v444_v7 = vrot.slane (!%p153_p2), %v1960_v2, 1  ;;  %v1969_v8 = vld [vmem:[%s1953_s20 + $0xc] sm:$0xff] (!%p153_p2)   ;;  %v445_v10 = vrot.slane (!%p153_p2), %v1851_v5, 1  ;;  %v1853_v11 = vld [vmem:[%s1953_s20 + $0x44] ss:$0 sps:$4 sm:$0x11] (!%p153_p2)  }
   0xb   : > { %v458_v9 = vsel (!%p153_p2), %vm443_vm0, %v456_v3, %v457_v4  ;;  %v459_v12 = vrot.slane (!%p153_p2), %v1965_v6, 1  ;;  %v447_v13 = vrot.slane (!%p153_p2), %v1969_v8, 1  ;;  %v460_v15 = vrot.slane (!%p153_p2), %v1853_v11, 1  ;;  %v1855_v16 = vld [vmem:[%s1953_s20 + $0x14] ss:$0 sps:$4 sm:$0x11] (!%p153_p2)  }
   0xc   : > { %476 = vrot.lane.b32.xlu1 (!%p153_p2), %v458_v9, %s1907_s21  ;;  %v446_v14 = vsel (!%p153_p2), %vm443_vm0, %v444_v7, %v445_v10  ;;  %v344_v17 = vshrl.u32 (!%p153_p2), %v1969_v8, 16  ;;  %v346_v18 = vshll.u32 (!%p153_p2), %v1969_v8, 16  ;;  %v332_v19 = vshrl.u32 (!%p153_p2), %v1960_v2, 16  ;;  %v1989_v33 = vld [vmem:[%s1953_s20 + $0x3c] sm:$0xff] (!%p153_p2)   ;;  %v1993_v37 = vld [vmem:[%s1953_s20 + $0xc] sm:$0xff] (!%p153_p2)   ;;  %s1911_s25 = smov (!%p153_p2), 20  }
   0xd   : > { %468 = vrot.lane.b32.xlu0 %v446_v14, %s1907_s21  ;;  %v334_v20 = vshll.u32 %v1960_v2, 16  ;;  %v461_v21 = vsel %vm443_vm0, %v459_v12, %v460_v15  ;;  %v448_v22 = vrot.slane %v1855_v16, 1  ;;  %v351_v23 = vshll.u32 %v1855_v16, 16  ;;  %v1860_v47 = vld [vmem:[%s1953_s20 + $0x44] ss:$0 sps:$4 sm:$0x11]  }
   0xe   : > { %v339_v24 = vshll.u32 %v1851_v5, 16  ;;  %v348_v25 = vrot.slane %v346_v18, 1  ;;  %v392_v27 = vshrl.u32 %v1965_v6, 16  ;;  %v394_v28 = vshll.u32 %v1965_v6, 16  ;;  %v2005_v50 = vld [vmem:[%s1953_s20 + $0x48] sm:$0xff]   ;;  %v2009_v53 = vld [vmem:[%s1953_s20 + $0x18] sm:$0xff]  }
   0xf   : > { %v336_v26 = vrot.slane %v334_v20, 1  ;;  %v449_v29 = vsel %vm443_vm0, %v447_v13, %v448_v22  ;;  %v353_v30 = vrot.slane %v351_v23, 1  ;;  %v399_v32 = vshll.u32 %v1853_v11, 16  ;;  %v1861_v51 = vld [vmem:[%s1953_s20 + $0x14] ss:$0 sps:$4 sm:$0x11]  }
  0x10   : > { %478 = vrot.lane.b32.xlu1 %v461_v21, %s1907_s21  ;;  %v341_v31 = vrot.slane %v339_v24, 1  ;;  %v349_v34 = vor.u32 %v348_v25, %v344_v17  ;;  %v396_v36 = vrot.slane %v394_v28, 1  ;;  %v380_v39 = vshrl.u32 %v1956_v0, 16  ;;  %v1862_v62 = vld [vmem:[%s1953_s20 + $0x50] ss:$0 sps:$4 sm:$0x11]  }
  0x11   : > { %470 = vrot.lane.b32.xlu0 %v449_v29, %s1907_s21  ;;  %v337_v35 = vor.u32 %v336_v26, %v332_v19  ;;  %v401_v38 = vrot.slane %v399_v32, 1  ;;  %v382_v40 = vshll.u32 %v1956_v0, 16  ;;  %v387_v41 = vshll.u32 %v1849_v1, 16  ;;  %v1863_v1 = vld [vmem:[%s1953_s20 + $0x20] ss:$0 sps:$4 sm:$0x11]  }
  0x12   : > { %v354_v42 = vsel %vm330_vm1, %v349_v34, %v353_v30  ;;  %v397_v44 = vor.u32 %v396_v36, %v392_v27  ;;  %v615_v48 = vshll.u32 %v1989_v33, 16  ;;  %v567_v54 = vshll.u32 %v1993_v37, 16  ;;  %v2041_v28 = vld [vmem:[%s1953_s20 + $0x48] sm:$0xff]   ;;  %v2044_v29 = vld [vmem:[%s1953_s20 + $0x18] sm:$0xff]   ;;  %s1912_s26 = smov 24   ;;  %s1913_s27 = smov 28  }
  0x13   : > { %v342_v43 = vsel %vm330_vm1, %v337_v35, %v341_v31  ;;  %v384_v45 = vrot.slane %v382_v40, 1  ;;  %v389_v46 = vrot.slane %v387_v41, 1  ;;  %v613_v55 = vshrl.u32 %v1989_v33, 16  ;;  %v2051_v34 = vld [vmem:[%s1953_s20 + $0x54] sm:$0xff]   ;;  %s1914_s30 = smov 32   ;;  %s1605_s11 = sshll.u32 %s1601_s16, 3 }
  0x14   : > { %429 = vrot.lane.b32.xlu1 %v354_v42, %s1908_s22  ;;  %v402_v49 = vsel %vm330_vm1, %v397_v44, %v401_v38  ;;  %v565_v56 = vshrl.u32 %v1993_v37, 16  ;;  %v617_v58 = vrot.slane %v615_v48, 1  ;;  %v620_v59 = vshll.u32 %v1860_v47, 16  ;;  %v2059_v38 = vld [vmem:[%s1953_s20 + $0x24] sm:$0xff]   ;;  %p175_p3 = scmp.lt.s32.totalorder %s1605_s11, 15 }
  0x15   : > { %427 = vrot.lane.b32.xlu0 %v342_v43, %s1908_s22  ;;  %v385_v52 = vor.u32 %v384_v45, %v380_v39  ;;  %v569_v60 = vrot.slane %v567_v54, 1  ;;  %v572_v61 = vshll.u32 %v1861_v51, 16  ;;  %v627_v63 = vshll.u32 %v2005_v50, 16  ;;  %v2062_v39 = vld [vmem:[%s1953_s20 + $0x20] ss:$0 sps:$4 sm:$0x11]  }
  0x16   : > { %v579_v3 = vshll.u32 %v2009_v53, 16  ;;  %v618_v4 = vor.u32 %v617_v58, %v613_v55  ;;  %v622_v5 = vrot.slane %v620_v59, 1  ;;  %v625_v7 = vshrl.u32 %v2005_v50, 16  ;;  %v2075_v48 = vld [vmem:[%s1953_s20 + $0x5c] ss:$0 sps:$4 sm:$0x11]  }
  0x17   : > { %v390_v57 = vsel %vm330_vm1, %v385_v52, %v389_v46  ;;  %v574_v9 = vrot.slane %v572_v61, 1  ;;  %v629_v10 = vrot.slane %v627_v63, 1  ;;  %v632_v11 = vshll.u32 %v1862_v62, 16  ;;  %v2089_v61 = vld [vmem:[%s1953_s20 + $0x48] sm:$0xff]   ;;  %s2563_s11 = smov (!%p175_p3, %s1605_s11), 15 }
  0x18   : > { %437 = vrot.lane.b32.xlu1 %v402_v49, %s1908_s22  ;;  %v577_v12 = vshrl.u32 %v2009_v53, 16  ;;  %v570_v13 = vor.u32 %v569_v60, %v565_v56  ;;  %v581_v14 = vrot.slane %v579_v3, 1  ;;  %v584_v15 = vshll.u32 %v1863_v1, 16  ;;  %s1757_s14 = sshll.u32 %s2563_s11, 3 }
  0x19   : > { %435 = vrot.lane.b32.xlu0 %v390_v57, %s1908_s22  ;;  %v623_v16 = vsel %vm330_vm1, %v618_v4, %v622_v5  ;;  %v630_v17 = vor.u32 %v629_v10, %v625_v7  ;;  %v634_v18 = vrot.slane %v632_v11, 1  ;;  %v688_v23 = vrot.slane %v1989_v33, 1  ;;  %v2098_v4 = vld [vmem:[%s1953_s20 + $0x50] ss:$0 sps:$4 sm:$0x11]   ;;  %s2390_s18 = scalar_lea.vmem %s2561_s4, %s1757_s14 }
  0x1a   : > { %v575_v19 = vsel %vm330_vm1, %v570_v13, %v574_v9  ;;  %v582_v20 = vor.u32 %v581_v14, %v577_v12  ;;  %v586_v21 = vrot.slane %v584_v15, 1  ;;  %v689_v24 = vrot.slane %v1860_v47, 1  ;;  %v2108_v14 = vld [vmem:[%s1953_s20 + $0x20] ss:$0 sps:$4 sm:$0x11]  }
  0x1b   : > { %v635_v22 = vsel %vm330_vm1, %v630_v17, %v634_v18  ;;  %v676_v26 = vrot.slane %v1993_v37, 1  ;;  %v677_v27 = vrot.slane %v1861_v51, 1  ;;  %v691_v31 = vrot.slane %v2005_v50, 1  ;;  %v2080_v51 = vld [vmem:[%s1953_s20 + $0x2c] ss:$0 sps:$4 sm:$0x11]  }
  0x1c   : > { %532 = vrot.lane.b32.xlu1 %v1989_v33, %s1909_s23  ;;  %v587_v25 = vsel %vm330_vm1, %v582_v20, %v586_v21  ;;  %v690_v30 = vsel %vm443_vm0, %v688_v23, %v689_v24  ;;  %v692_v32 = vrot.slane %v1862_v62, 1  ;;  %v679_v33 = vrot.slane %v2009_v53, 1  ;;  %v2119_v23 = vld [vmem:[%s1953_s20 + $0x54] sm:$0xff]  }
  0x1d   : > { %524 = vrot.lane.b32.xlu0 %v1993_v37, %s1909_s23  ;;  %v678_v35 = vsel %vm443_vm0, %v676_v26, %v677_v27  ;;  %v680_v36 = vrot.slane %v1863_v1, 1  ;;  %v2055_v37 = vld [vmem:[%s1953_s20 + $0x50] ss:$0 sps:$4 sm:$0x11]   ;;  %v847_v41 = vshll.u32 %v2041_v28, 16  ;;  %v799_v44 = vshll.u32 %v2044_v29, 16 }
  0x1e   : > { %v693_v40 = vsel %vm443_vm0, %v691_v31, %v692_v32  ;;  %v852_v43 = vshll.u32 %v2055_v37, 16  ;;  %v859_v45 = vshll.u32 %v2051_v34, 16  ;;  %v845_v46 = vshrl.u32 %v2041_v28, 16  ;;  %v2095_v1 = vld [vmem:[%s1953_s20 + $0x18] sm:$0xff]   ;;  %v2125_v26 = vld [vmem:[%s1953_s20 + $0x24] sm:$0xff]  }
  0x1f   : > { %v681_v42 = vsel %vm443_vm0, %v679_v33, %v680_v36  ;;  %v804_v47 = vshll.u32 %v2062_v39, 16  ;;  %v811_v49 = vshll.u32 %v2059_v38, 16  ;;  %v797_v52 = vshrl.u32 %v2044_v29, 16  ;;  %v2131_v31 = vld [vmem:[%s1953_s20 + $0x5c] ss:$0 sps:$4 sm:$0x11]  }
  0x20   : > { %534 = vrot.lane.b32.xlu1 %v2005_v50, %s1909_s23  ;;  %v849_v50 = vrot.slane %v847_v41, 1  ;;  %v854_v54 = vrot.slane %v852_v43, 1  ;;  %v857_v55 = vshrl.u32 %v2051_v34, 16  ;;  %v861_v56 = vrot.slane %v859_v45, 1 }
  0x21   : > { %526 = vrot.lane.b32.xlu0 %v2009_v53, %s1909_s23  ;;  %v801_v53 = vrot.slane %v799_v44, 1  ;;  %v809_v57 = vshrl.u32 %v2059_v38, 16  ;;  %v806_v58 = vrot.slane %v804_v47, 1  ;;  %v864_v59 = vshll.u32 %v2075_v48, 16 }
  0x22   : > { %v813_v60 = vrot.slane %v811_v49, 1  ;;  %v850_v62 = vor.u32 %v849_v50, %v845_v46  ;;  %v816_v63 = vshll.u32 %v2080_v51, 16  ;;  %v406_v5 = vshll.u32 %v2089_v61, 16 }
  0x23   : > { %v802_v3 = vor.u32 %v801_v53, %v797_v52  ;;  %v862_v9 = vor.u32 %v861_v56, %v857_v55  ;;  %v866_v10 = vrot.slane %v864_v59, 1  ;;  %v358_v15 = vshll.u32 %v2095_v1, 16 }
  0x24   : > { %668 = vrot.lane.b32.xlu1 %v623_v16, %s1910_s24  ;;  %v855_v7 = vsel %vm330_vm1, %v850_v62, %v854_v54  ;;  %v814_v12 = vor.u32 %v813_v60, %v809_v57  ;;  %v818_v13 = vrot.slane %v816_v63, 1  ;;  %v920_v16 = vrot.slane %v2041_v28, 1 }
  0x25   : > { %660 = vrot.lane.b32.xlu0 %v575_v19, %s1910_s24  ;;  %v807_v11 = vsel %vm330_vm1, %v802_v3, %v806_v58  ;;  %v921_v17 = vrot.slane %v2055_v37, 1  ;;  %v411_v18 = vshll.u32 %v2098_v4, 16  ;;  %v908_v19 = vrot.slane %v2044_v29, 1  ;;  %v1898_v3 = vld [vmem:[%s2558_s1 + $0x10] ss:$0 sps:$4 sm:$0x33]  }
  0x26   : > { %v909_v20 = vrot.slane %v2062_v39, 1  ;;  %v404_v21 = vshrl.u32 %v2089_v61, 16  ;;  %v867_v24 = vsel %vm330_vm1, %v862_v9, %v866_v10  ;;  %v819_v27 = vsel %vm330_vm1, %v814_v12, %v818_v13  ;;  %v2180_v12 = vld [vmem:[%s1953_s20 + $0x54] sm:$0xff]  }
  0x27   : > { %v418_v32 = vshll.u32 %v2119_v23, 16  ;;  %v922_v33 = vsel %vm443_vm0, %v920_v16, %v921_v17  ;;  %v370_v41 = vshll.u32 %v2125_v26, 16  ;;  %v923_v43 = vrot.slane %v2051_v34, 1  ;;  %v1881_v17 = vld [vmem:[%s1953_s20 + $0x24] sm:$0xff]  }
  0x28   : > { %670 = vrot.lane.b32.xlu1 %v635_v22, %s1910_s24  ;;  %v408_v22 = vrot.slane %v406_v5, 1  ;;  %v910_v36 = vsel %vm443_vm0, %v908_v19, %v909_v20  ;;  %v924_v44 = vrot.slane %v2075_v48, 1  ;;  %v911_v45 = vrot.slane %v2059_v38, 1  ;;  %v1882_v19 = vld [vmem:[%s1953_s20 + $0x60] sm:$0xff]  }
  0x29   : > { %662 = vrot.lane.b32.xlu0 %v587_v25, %s1910_s24  ;;  %v356_v25 = vshrl.u32 %v2095_v1, 16  ;;  %v912_v46 = vrot.slane %v2080_v51, 1  ;;  %v416_v49 = vshrl.u32 %v2119_v23, 16  ;;  %v420_v50 = vrot.slane %v418_v32, 1  ;;  %v1897_v51 = vld [vmem:[%s2558_s1 + $0x8] sm:$0xff]  }
  0x2a   : > { %v423_v52 = vshll.u32 %v2131_v31, 16  ;;  %v372_v48 = vrot.slane %v370_v41, 1  ;;  %v925_v54 = vsel %vm443_vm0, %v923_v43, %v924_v44  ;;  %v462_v62 = vrot.slane %v2089_v61, 1  ;;  %v1884_v20 = vld [vmem:[%s1953_s20 + $0x5c] ss:$0 sps:$4 sm:$0x11]  }
  0x2b   : > { %v421_v55 = vor.u32 %v420_v50, %v416_v49  ;;  %v913_v57 = vsel %vm443_vm0, %v911_v45, %v912_v46  ;;  %v463_v63 = vrot.slane %v2098_v4, 1  ;;  %v451_v9 = vrot.slane %v2108_v14, 1  ;;  %v1886_v32 = vld [vmem:[%s1953_s20 + $0x68] ss:$0 sps:$4 sm:$0x11]  }
  0x2c   : > { %708 = vrot.lane.b32.xlu1 %v690_v30, %s1911_s25  ;;  %v413_v30 = vrot.slane %v411_v18, 1  ;;  %v425_v56 = vrot.slane %v423_v52, 1  ;;  %v465_v4 = vrot.slane %v2119_v23, 1  ;;  %v1123_v13 = vsel %vm1121_vm2, %v1898_v3, 0 }
  0x2d   : > { %700 = vrot.lane.b32.xlu0 %v678_v35, %s1911_s25  ;;  %v409_v35 = vor.u32 %v408_v22, %v404_v21  ;;  %v464_v10 = vsel %vm443_vm0, %v462_v62, %v463_v63  ;;  %v639_v21 = vshll.u32 %v2180_v12, 16  ;;  %v656_v45 = vshll.u32 %v1886_v32, 16 }
  0x2e   : > { %v426_v60 = vsel %vm330_vm1, %v421_v55, %v425_v56  ;;  %v694_v55 = vrot.slane %v2180_v12, 1  ;;  %v695_v56 = vrot.slane %v1884_v20, 1  ;;  %v697_v62 = vrot.slane %v1882_v19, 1 }
  0x2f   : > { %v414_v47 = vsel %vm330_vm1, %v409_v35, %v413_v30  ;;  %v641_v30 = vrot.slane %v639_v21, 1  ;;  %v698_v63 = vrot.slane %v1886_v32, 1  ;;  %vm1104_vm11 = vcmask 293888  }
  0x30   : > { %710 = vrot.lane.b32.xlu1 %v693_v40, %s1911_s25  ;;  %v2138_v40 = vld [vmem:[%s1953_s20 + $0x2c] ss:$0 sps:$4 sm:$0x11]   ;;  %vm1447_vm12 = vcmask 60416   ;;  %vm1528_vm13 = vcmask 126016  }
  0x31   : > { %702 = vrot.lane.b32.xlu0 %v681_v42, %s1911_s25  ;;  %v1896_v42 = vld [vmem:[%s2558_s1] sm:$0xff]   ;;  %v454_v16 = vrot.slane %v2138_v40, 1 }
  0x32   : > { %1802 = vmatprep.subr.bf16.mxu0 %v1896_v42  ;;  %1824 = vmatprep.subr.bf16.mxu1 %v1896_v42 }
  0x33   : > { %1803 = vmatpush3.bf16.msra.mxu0 %v1896_v42  ;;  %1827 = vmatpush3.bf16.msra.mxu1 %v1896_v42 }
  0x34   : > { %764 = vrot.lane.b32.xlu1 %v2041_v28, %s1912_s26  ;;  %v360_v28 = vrot.slane %v358_v15, 1  ;;  %1804 = vmatprep.subr.bf16.mxu0 %v1897_v51  ;;  %v453_v15 = vrot.slane %v2125_v26, 1 }
  0x35   : > { %756 = vrot.lane.b32.xlu0 %v2044_v29, %s1912_s26  ;;  %v363_v29 = vshll.u32 %v2108_v14, 16  ;;  %1825 = vmatprep.subr.bf16.mxu1 %v1897_v51 }
  0x36   : > { %v361_v37 = vor.u32 %v360_v28, %v356_v25  ;;  %v455_v22 = vsel %vm443_vm0, %v453_v15, %v454_v16  ;;  %v1885_v25 = vld [vmem:[%s1953_s20 + $0x2c] ss:$0 sps:$4 sm:$0x11]   ;;  %v637_v28 = vshrl.u32 %v2180_v12, 16  ;;  %v2232_v15 = vld [vmem:[%s1953_s20 + $0x3c] sm:$0xff]  }
  0x37   : > { %v365_v39 = vrot.slane %v363_v29, 1  ;;  %1805 = vmatpush3.bf16.msra.mxu0 %v1897_v51  ;;  %1828 = vmatpush3.bf16.msra.mxu1 %v1897_v51  ;;  %v589_v29 = vshrl.u32 %v1881_v17, 16  ;;  %v1893_v16 = vld [vmem:[%s1953_s20 + $0x38] ss:$0 sps:$4 sm:$0x11]  }
  0x38   : > { %766 = vrot.lane.b32.xlu1 %v2051_v34, %s1912_s26  ;;  %v368_v34 = vshrl.u32 %v2125_v26, 16  ;;  %1830 = vmatprep.subr.msk.bf16.mxu0 %vm1121_vm2, %v1898_v3  ;;  %v642_v42 = vor.u32 %v641_v30, %v637_v28  ;;  %v1895_v28 = vld [vmem:[%s1953_s20 + $0x44] ss:$0 sps:$4 sm:$0x11]  }
  0x39   : > { %758 = vrot.lane.b32.xlu0 %v2059_v38, %s1912_s26  ;;  %v366_v53 = vsel %vm330_vm1, %v361_v37, %v365_v39  ;;  %v375_v38 = vshll.u32 %v2138_v40, 16  ;;  %1831 = vmatprep.subr.msk.bf16.mxu1 %vm1121_vm2, %v1898_v3  ;;  %v1887_v37 = vld [vmem:[%s1953_s20 + $0x38] ss:$0 sps:$4 sm:$0x11]   ;;  %v649_v40 = vshrl.u32 %v1882_v19, 16  ;;  %v2216_v3 = vld [vmem:[%s1953_s20 + $0x60] sm:$0xff]  }
  0x3a   : > { %v373_v58 = vor.u32 %v372_v48, %v368_v34  ;;  %v608_v50 = vshll.u32 %v1887_v37, 16  ;;  %v658_v34 = vrot.slane %v656_v45, 1 }
  0x3b   : > { %v377_v59 = vrot.slane %v375_v38, 1  ;;  %1807 = vmatpush3.bf16.msra.mxu0 %v1123_v13  ;;  %1829 = vmatpush3.bf16.msra.mxu1 %v1123_v13  ;;  %v871_v13 = vshll.u32 %v2216_v3, 16 }
  0x3c   : > { %900 = vrot.lane.b32.xlu1 %v855_v7, %s1913_s27  ;;  %v450_v7 = vrot.slane %v2095_v1, 1  ;;  %v610_v51 = vrot.slane %v608_v50, 1 }
  0x3d   : > { %892 = vrot.lane.b32.xlu0 %v807_v11, %s1913_s27  ;;  %v378_v5 = vsel %vm330_vm1, %v373_v58, %v377_v59  ;;  %v466_v11 = vrot.slane %v2131_v31, 1  ;;  %v644_v31 = vshll.u32 %v1884_v20, 16  ;;  %v682_v58 = vrot.slane %v1881_v17, 1 }
  0x3e   : > { %v452_v14 = vsel %vm443_vm0, %v450_v7, %v451_v9  ;;  %v683_v59 = vrot.slane %v1885_v25, 1  ;;  %v686_v9 = vrot.slane %v1887_v37, 1  ;;  %v873_v20 = vrot.slane %v871_v13, 1 }
  0x3f   : > { %v467_v18 = vsel %vm443_vm0, %v465_v4, %v466_v11  ;;  %v646_v43 = vrot.slane %v644_v31, 1  ;;  %v699_v4 = vsel %vm443_vm0, %v697_v62, %v698_v63  ;;  %v2226_v11 = vld [vmem:[%s1953_s20 + $0x6c] sm:$0xff]   ;;  %v833_v31 = vshrl.u32 %v2232_v15, 16 }
  0x40   : > { %902 = vrot.lane.b32.xlu1 %v867_v24, %s1913_s27  ;;  %v1883_v24 = vld [vmem:[%s1953_s20 + $0x30] sm:$0xff]   ;;  %v881_v30 = vshrl.u32 %v2226_v11, 16  ;;  %v917_v62 = vrot.slane %v2232_v15, 1  ;;  %v918_v63 = vrot.slane %v1895_v28, 1 }
  0x41   : > { %894 = vrot.lane.b32.xlu0 %v819_v27, %s1913_s27  ;;  %v591_v27 = vshll.u32 %v1881_v17, 16  ;;  %v603_v39 = vshll.u32 %v1883_v24, 16  ;;  %v601_v41 = vshrl.u32 %v1883_v24, 16  ;;  %v647_v52 = vsel %vm330_vm1, %v642_v42, %v646_v43 }
  0x42   : > { %v685_v7 = vrot.slane %v1883_v24, 1 }
  0x43   : > { %v593_v35 = vrot.slane %v591_v27, 1  ;;  %v605_v49 = vrot.slane %v603_v39, 1  ;;  %v828_v27 = vshll.u32 %v1893_v16, 16 }
  0x44   : > { %940 = vrot.lane.b32.xlu1 %v922_v33, %s1914_s30  ;;  %v651_v33 = vshll.u32 %v1882_v19, 16 }
  0x45   : > { %932 = vrot.lane.b32.xlu0 %v910_v36, %s1914_s30  ;;  %v596_v36 = vshll.u32 %v1885_v25, 16  ;;  %v594_v46 = vor.u32 %v593_v35, %v589_v29  ;;  %v606_v38 = vor.u32 %v605_v49, %v601_v41  ;;  %v835_v29 = vshll.u32 %v2232_v15, 16 }
  0x46   : > { %v653_v44 = vrot.slane %v651_v33, 1  ;;  %v830_v39 = vrot.slane %v828_v27, 1  ;;  %v840_v41 = vshll.u32 %v1895_v28, 16 }
  0x48   : > { %439 = vrot.lane.b32.xlu1 %v414_v47, %s1908_s22  ;;  %v598_v47 = vrot.slane %v596_v36, 1 }
  0x49   : > { %431 = vrot.lane.b32.xlu0 %v366_v53, %s1908_s22  ;;  %v654_v53 = vor.u32 %v653_v44, %v649_v40  ;;  %v837_v40 = vrot.slane %v835_v29, 1 }
  0x4a   : > { %v599_v48 = vsel %vm330_vm1, %v594_v46, %v598_v47  ;;  %v842_v47 = vrot.slane %v840_v41, 1 }
  0x4b   : > { %v838_v46 = vor.u32 %v837_v40, %v833_v31 }
  0x4c   : > { %942 = vrot.lane.b32.xlu1 %v925_v54, %s1914_s30  ;;  %v659_v54 = vsel %vm330_vm1, %v654_v53, %v658_v34  ;;  %v1264_v34 = vlaneseq }
  0x4d   : > { %934 = vrot.lane.b32.xlu0 %v913_v57, %s1914_s30  ;;  %v611_v57 = vsel %vm330_vm1, %v606_v38, %v610_v51  ;;  %v915_v51 = vrot.slane %v1893_v16, 1 }
  0x50   : > { %441 = vrot.lane.b32.xlu1 %v426_v60, %s1908_s22  ;;  %v696_v60 = vsel %vm443_vm0, %v694_v55, %v695_v56 }
  0x51   : > { %433 = vrot.lane.b32.xlu0 %v378_v5, %s1908_s22  ;;  %v684_v5 = vsel %vm443_vm0, %v682_v58, %v683_v59  ;;  %v1265_v59 = vshrl.u32 %v1264_v34, 7 }
  0x54   : > { %480 = vrot.lane.b32.xlu1 %v464_v10, %s1907_s21  ;;  %v2220_v10 = vld [vmem:[%s1953_s20 + $0x30] sm:$0xff]  }
  0x55   : > { %472 = vrot.lane.b32.xlu0 %v452_v14, %s1907_s21  ;;  %v687_v14 = vsel %vm443_vm0, %v685_v7, %v686_v9  ;;  %v914_v38 = vrot.slane %v2220_v10, 1 }
  0x58   : > { %482 = vrot.lane.b32.xlu1 %v467_v18, %s1907_s21  ;;  %v869_v18 = vshrl.u32 %v2216_v3, 16 }
  0x59   : > { %474 = vrot.lane.b32.xlu0 %v455_v22, %s1907_s21  ;;  %v1894_v22 = vld [vmem:[%s1953_s20 + $0x74] ss:$0 sps:$4 sm:$0x11]  }
  0x5a   : > { %v874_v32 = vor.u32 %v873_v20, %v869_v18  ;;  %v888_v36 = vshll.u32 %v1894_v22, 16  ;;  %v930_v58 = vrot.slane %v1894_v22, 1 }
  0x5c   : > { %536 = vrot.lane.b32.xlu1 %v2180_v12, %s1909_s23  ;;  %v1892_v12 = vld [vmem:[%s1953_s20 + $0x68] ss:$0 sps:$4 sm:$0x11]   ;;  %v890_v44 = vrot.slane %v888_v36, 1 }
  0x5d   : > { %528 = vrot.lane.b32.xlu0 %v1881_v17, %s1909_s23  ;;  %v823_v17 = vshll.u32 %v2220_v10, 16  ;;  %v876_v21 = vshll.u32 %v1892_v12, 16  ;;  %v927_v53 = vrot.slane %v1892_v12, 1 }
  0x5f   : > { %v825_v25 = vrot.slane %v823_v17, 1  ;;  %v878_v33 = vrot.slane %v876_v21, 1 }
  0x60   : > { %538 = vrot.lane.b32.xlu1 %v1882_v19, %s1909_s23  ;;  %v821_v19 = vshrl.u32 %v2220_v10, 16 }
  0x61   : > { %530 = vrot.lane.b32.xlu0 %v1883_v24, %s1909_s23  ;;  %v883_v24 = vshll.u32 %v2226_v11, 16  ;;  %v879_v42 = vsel %vm330_vm1, %v874_v32, %v878_v33 }
  0x62   : > { %v826_v37 = vor.u32 %v825_v25, %v821_v19 }
  0x63   : > { %v885_v35 = vrot.slane %v883_v24, 1 }
  0x64   : > { %672 = vrot.lane.b32.xlu1 %v647_v52, %s1910_s24  ;;  %v831_v45 = vsel %vm330_vm1, %v826_v37, %v830_v39  ;;  %v926_v52 = vrot.slane %v2216_v3, 1 }
  0x65   : > { %664 = vrot.lane.b32.xlu0 %v599_v48, %s1910_s24  ;;  %v886_v43 = vor.u32 %v885_v35, %v881_v30  ;;  %v843_v48 = vsel %vm330_vm1, %v838_v46, %v842_v47 }
  0x66   : > { %v928_v56 = vsel %vm443_vm0, %v926_v52, %v927_v53 }
  0x67   : > { %v891_v50 = vsel %vm330_vm1, %v886_v43, %v890_v44 }
  0x68   : > { %674 = vrot.lane.b32.xlu1 %v659_v54, %s1910_s24 }
  0x69   : > { %666 = vrot.lane.b32.xlu0 %v611_v57, %s1910_s24  ;;  %v929_v57 = vrot.slane %v2226_v11, 1 }
  0x6b   : > { %v931_v7 = vsel %vm443_vm0, %v929_v57, %v930_v58 }
  0x6c   : > { %712 = vrot.lane.b32.xlu1 %v696_v60, %s1911_s25  ;;  %v916_v60 = vsel %vm443_vm0, %v914_v38, %v915_v51 }
  0x6d   : > { %704 = vrot.lane.b32.xlu0 %v684_v5, %s1911_s25 }
  0x70   : > { %714 = vrot.lane.b32.xlu1 %v699_v4, %s1911_s25 }
  0x71   : > { %706 = vrot.lane.b32.xlu0 %v687_v14, %s1911_s25 }
  0x74   : > { %768 = vrot.lane.b32.xlu1 %v2216_v3, %s1912_s26  ;;  %v1261_v3 = vld [vmem:[%s2560_s3] sm:$0x1] }
  0x75   : > { %760 = vrot.lane.b32.xlu0 %v2220_v10, %s1912_s26  ;;  %v1262_v9 = vadd.f32 1.0, %v1261_v3  ;;  %v1266_v10 = vsub.s32 0, %v1265_v59 }
  0x77   : > { %v1267_v13 = vrot.slane %v1262_v9, %v1266_v10 }
  0x78   : > { %770 = vrot.lane.b32.xlu1 %v2226_v11, %s1912_s26  ;;  %v919_v11 = vsel %vm443_vm0, %v917_v62, %v918_v63 }
  0x79   : > { %762 = vrot.lane.b32.xlu0 %v2232_v15, %s1912_s26 }
  0x7c   : > { %904 = vrot.lane.b32.xlu1 %v879_v42, %s1913_s27 }
  0x7d   : > { %896 = vrot.lane.b32.xlu0 %v831_v45, %s1913_s27 }
  0x7e   : > { %v477_v49 = vpop.permute.xlu1 %476 }
  0x7f   : > { %v469_v54 = vpop.permute.xlu0 %468 }
  0x80   : > { %906 = vrot.lane.b32.xlu1 %v891_v50, %s1913_s27 }
  0x81   : > { %898 = vrot.lane.b32.xlu0 %v843_v48, %s1913_s27 }
  0x82   : > { %v2264_v55 = vpop.permute.xlu1 %478 }
  0x83   : > { %v2273_v5 = vpop.permute.xlu0 %470 }
  0x84   : > { %944 = vrot.lane.b32.xlu1 %v928_v56, %s1914_s30 }
  0x85   : > { %936 = vrot.lane.b32.xlu0 %v916_v60, %s1914_s30 }
  0x86   : > { %v430_v4 = vpop.permute.xlu1 %429 }
  0x87   : > { %v428_v12 = vpop.permute.xlu0 %427  ;;  %v952_v48 = vsel %vm948_vm3, %v1969_v8, %v430_v4 }
  0x88   : > { %946 = vrot.lane.b32.xlu1 %v931_v7, %s1914_s30  ;;  %v950_v37 = vsel %vm948_vm3, %v1960_v2, %v428_v12  ;;  %v969_v58 = vsel %vm965_vm4, %v952_v48, %v2273_v5 }
  0x89   : > { %938 = vrot.lane.b32.xlu0 %v919_v11, %s1914_s30  ;;  %v967_v42 = vsel %vm965_vm4, %v950_v37, %v469_v54 }
  0x8a   : > { %v438_v14 = vpop.permute.xlu1 %437 }
  0x8b   : > { %v436_v15 = vpop.permute.xlu0 %435  ;;  %v960_v50 = vsel %vm948_vm3, %v1965_v6, %v438_v14 }
  0x8c   : > { %v958_v35 = vsel %vm948_vm3, %v1956_v0, %v436_v15  ;;  %v977_v6 = vsel %vm965_vm4, %v960_v50, %v2264_v55 }
  0x8d   : > { %1268 = vrot.lane.b32.xlu0 %v1267_v13, %s1907_s21  ;;  %v975_v40 = vsel %vm965_vm4, %v958_v35, %v477_v49 }
  0x8e   : > { %v533_v16 = vpop.permute.xlu1 %532 }
  0x8f   : > { %v525_v17 = vpop.permute.xlu0 %524  ;;  %v992_v41 = vsel %vm982_vm5, %v975_v40, %v533_v16 }
  0x90   : > { %v984_v44 = vsel %vm982_vm5, %v967_v42, %v525_v17 }
  0x92   : > { %v535_v18 = vpop.permute.xlu1 %534 }
  0x93   : > { %v527_v19 = vpop.permute.xlu0 %526  ;;  %v994_v57 = vsel %vm982_vm5, %v977_v6, %v535_v18 }
  0x94   : > { %v986_v59 = vsel %vm982_vm5, %v969_v58, %v527_v19 }
  0x96   : > { %v669_v20 = vpop.permute.xlu1 %668 }
  0x97   : > { %v661_v21 = vpop.permute.xlu0 %660  ;;  %v1009_v0 = vsel %vm999_vm6, %v992_v41, %v669_v20 }
  0x98   : > { %v1001_v2 = vsel %vm999_vm6, %v984_v44, %v661_v21 }
  0x9a   : > { %v671_v22 = vpop.permute.xlu1 %670 }
  0x9b   : > { %v663_v24 = vpop.permute.xlu0 %662  ;;  %v1011_v60 = vsel %vm999_vm6, %v994_v57, %v671_v22 }
  0x9c   : > { %v1003_v63 = vsel %vm999_vm6, %v986_v59, %v663_v24 }
  0x9e   : > { %v709_v25 = vpop.permute.xlu1 %708 }
  0x9f   : > { %v701_v27 = vpop.permute.xlu0 %700  ;;  %v1026_v46 = vsel %vm1016_vm7, %v1009_v0, %v709_v25 }
  0xa0   : > { %v1018_v47 = vsel %vm1016_vm7, %v1001_v2, %v701_v27 }
  0xa2   : > { %v711_v28 = vpop.permute.xlu1 %710 }
  0xa3   : > { %v703_v29 = vpop.permute.xlu0 %702  ;;  %v1028_v3 = vsel %vm1016_vm7, %v1011_v60, %v711_v28 }
  0xa4   : > { %v1020_v7 = vsel %vm1016_vm7, %v1003_v63, %v703_v29 }
  0xa6   : > { %v765_v30 = vpop.permute.xlu1 %764 }
  0xa7   : > { %v757_v31 = vpop.permute.xlu0 %756  ;;  %v1043_v49 = vsel %vm1033_vm8, %v1026_v46, %v765_v30 }
  0xa8   : > { %v1035_v52 = vsel %vm1033_vm8, %v1018_v47, %v757_v31 }
  0xaa   : > { %v767_v32 = vpop.permute.xlu1 %766 }
  0xab   : > { %v759_v33 = vpop.permute.xlu0 %758  ;;  %v1045_v55 = vsel %vm1033_vm8, %v1028_v3, %v767_v32 }
  0xac   : > { %v1037_v9 = vsel %vm1033_vm8, %v1020_v7, %v759_v33 }
  0xae   : > { %v901_v36 = vpop.permute.xlu1 %900 }
  0xaf   : > { %v893_v39 = vpop.permute.xlu0 %892  ;;  %v1060_v53 = vsel %vm1050_vm9, %v1043_v49, %v901_v36 }
  0xb0   : > { %v1052_v38 = vsel %vm1050_vm9, %v1035_v52, %v893_v39 }
  0xb2   : > { %v903_v43 = vpop.permute.xlu1 %902 }
  0xb3   : > { %v895_v45 = vpop.permute.xlu0 %894  ;;  %v1062_v10 = vsel %vm1050_vm9, %v1045_v55, %v903_v43 }
  0xb4   : > { %v1054_v5 = vsel %vm1050_vm9, %v1037_v9, %v895_v45 }
  0xb6   : > { %v941_v34 = vpop.permute.xlu1 %940 }
  0xb7   : > { %v933_v51 = vpop.permute.xlu0 %932  ;;  %v1077_v54 = vsel %vm1067_vm10, %v1060_v53, %v941_v34 }
  0xb8   : > { %v1069_v56 = vsel %vm1067_vm10, %v1052_v38, %v933_v51  ;;  %1816 = vmatprep.mubr.msk.bf16.mxu1 %vm1104_vm11, %v1077_v54 }
  0xb9   : > { %1808 = vmatprep.mubr.msk.bf16.mxu0 %vm1104_vm11, %v1069_v56 }
  0xba   : > { %v440_v8 = vpop.permute.xlu1 %439 }
  0xbb   : > { %v432_v62 = vpop.permute.xlu0 %431  ;;  %v962_v42 = vsel %vm948_vm3, %v2089_v61, %v440_v8 }
  0xbc   : > { %v954_v43 = vsel %vm948_vm3, %v2095_v1, %v432_v62 }
  0xbe   : > { %v943_v4 = vpop.permute.xlu1 %942 }
  0xbf   : > { %v1079_v11 = vsel %vm1067_vm10, %v1062_v10, %v943_v4  ;;  %v935_v12 = vpop.permute.xlu0 %934 }
  0xc0   : > { %v1071_v13 = vsel %vm1067_vm10, %v1054_v5, %v935_v12  ;;  %1817 = vmatmul.mubr.msk.bf16.vlgmr.msra.gmra.mrb[0].mxu1 %vm1104_vm11, %v1079_v11  ;;  %v2369_v12 = vld [vmem:[%s2559_s2] ss:$0 sm:$0xff] }
  0xc1   : > { %1809 = vmatmul.mubr.msk.bf16.vlgmr.msra.gmra.mrb[0].mxu0 %vm1104_vm11, %v1071_v13 }
  0xc2   : > { %v442_v14 = vpop.permute.xlu1 %441 }
  0xc3   : > { %v434_v15 = vpop.permute.xlu0 %433  ;;  %v964_v0 = vsel %vm948_vm3, %v2119_v23, %v442_v14 }
  0xc4   : > { %v956_v1 = vsel %vm948_vm3, %v2125_v26, %v434_v15 }
  0xc6   : > { %v481_v16 = vpop.permute.xlu1 %480 }
  0xc7   : > { %v473_v17 = vpop.permute.xlu0 %472  ;;  %v979_v44 = vsel %vm965_vm4, %v962_v42, %v481_v16 }
  0xc8   : > { %v971_v45 = vsel %vm965_vm4, %v954_v43, %v473_v17 }
  0xca   : > { %v483_v18 = vpop.permute.xlu1 %482 }
  0xcb   : > { %v475_v19 = vpop.permute.xlu0 %474  ;;  %v981_v53 = vsel %vm965_vm4, %v964_v0, %v483_v18 }
  0xcc   : > { %v973_v48 = vsel %vm965_vm4, %v956_v1, %v475_v19 }
  0xce   : > { %v537_v20 = vpop.permute.xlu1 %536 }
  0xcf   : > { %v529_v21 = vpop.permute.xlu0 %528  ;;  %v996_v2 = vsel %vm982_vm5, %v979_v44, %v537_v20 }
  0xd0   : > { %v988_v47 = vsel %vm982_vm5, %v971_v45, %v529_v21 }
  0xd2   : > { %v539_v22 = vpop.permute.xlu1 %538 }
  0xd3   : > { %v531_v24 = vpop.permute.xlu0 %530  ;;  %v998_v38 = vsel %vm982_vm5, %v981_v53, %v539_v22 }
  0xd4   : > { %v990_v6 = vsel %vm982_vm5, %v973_v48, %v531_v24 }
  0xd6   : > { %v673_v25 = vpop.permute.xlu1 %672 }
  0xd7   : > { %v665_v27 = vpop.permute.xlu0 %664  ;;  %v1013_v49 = vsel %vm999_vm6, %v996_v2, %v673_v25 }
  0xd8   : > { %v1005_v61 = vsel %vm999_vm6, %v988_v47, %v665_v27 }
  0xda   : > { %v675_v28 = vpop.permute.xlu1 %674 }
  0xdb   : > { %v667_v29 = vpop.permute.xlu0 %666  ;;  %v1015_v57 = vsel %vm999_vm6, %v998_v38, %v675_v28 }
  0xdc   : > { %v1007_v59 = vsel %vm999_vm6, %v990_v6, %v667_v29 }
  0xde   : > { %v713_v30 = vpop.permute.xlu1 %712 }
  0xdf   : > { %v705_v31 = vpop.permute.xlu0 %704  ;;  %v1030_v52 = vsel %vm1016_vm7, %v1013_v49, %v713_v30 }
  0xe0   : > { %v1022_v23 = vsel %vm1016_vm7, %v1005_v61, %v705_v31 }
  0xe2   : > { %v715_v32 = vpop.permute.xlu1 %714 }
  0xe3   : > { %v707_v33 = vpop.permute.xlu0 %706  ;;  %v1032_v60 = vsel %vm1016_vm7, %v1015_v57, %v715_v32 }
  0xe4   : > { %v1024_v63 = vsel %vm1016_vm7, %v1007_v59, %v707_v33 }
  0xe6   : > { %v769_v35 = vpop.permute.xlu1 %768 }
  0xe7   : > { %v761_v36 = vpop.permute.xlu0 %760  ;;  %v1047_v34 = vsel %vm1033_vm8, %v1030_v52, %v769_v35 }
  0xe8   : > { %v1039_v51 = vsel %vm1033_vm8, %v1022_v23, %v761_v36 }
  0xea   : > { %v771_v37 = vpop.permute.xlu1 %770 }
  0xeb   : > { %v763_v39 = vpop.permute.xlu0 %762  ;;  %v1049_v3 = vsel %vm1033_vm8, %v1032_v60, %v771_v37 }
  0xec   : > { %v1041_v7 = vsel %vm1033_vm8, %v1024_v63, %v763_v39 }
  0xee   : > { %v905_v40 = vpop.permute.xlu1 %904 }
  0xef   : > { %v897_v41 = vpop.permute.xlu0 %896  ;;  %v1064_v54 = vsel %vm1050_vm9, %v1047_v34, %v905_v40 }
  0xf0   : > { %v1056_v26 = vsel %vm1050_vm9, %v1039_v51, %v897_v41 }
  0xf2   : > { %v907_v46 = vpop.permute.xlu1 %906 }
  0xf3   : > { %v899_v50 = vpop.permute.xlu0 %898  ;;  %v1066_v55 = vsel %vm1050_vm9, %v1049_v3, %v907_v46 }
  0xf4   : > { %v1058_v10 = vsel %vm1050_vm9, %v1041_v7, %v899_v50 }
  0xf6   : > { %v945_v56 = vpop.permute.xlu1 %944 }
  0xf7   : > { %v1081_v58 = vsel %vm1067_vm10, %v1064_v54, %v945_v56  ;;  %v937_v8 = vpop.permute.xlu0 %936 }
  0xf8   : > { %v1073_v62 = vsel %vm1067_vm10, %v1056_v26, %v937_v8  ;;  %1820 = vmatprep.mubr.msk.bf16.mxu1 %vm1104_vm11, %v1081_v58 }
  0xf9   : > { %1812 = vmatprep.mubr.msk.bf16.mxu0 %vm1104_vm11, %v1073_v62 }
  0xfa   : > { %v947_v9 = vpop.permute.xlu1 %946 }
  0xfb   : > { %v1083_v4 = vsel %vm1067_vm10, %v1066_v55, %v947_v9  ;;  %v939_v5 = vpop.permute.xlu0 %938 }
  0xfc   : > { %v1075_v11 = vsel %vm1067_vm10, %v1058_v10, %v939_v5  ;;  %1821 = vmatmul.mubr.msk.bf16.gmra.mrb[4].mxu1 %vm1104_vm11, %v1083_v4 }
  0xfd   : > { %1813 = vmatmul.mubr.msk.bf16.gmra.mrb[4].mxu0 %vm1104_vm11, %v1075_v11 }
 0x193   : > { %v1818_v13 = vpop.f32.mrb[0].mxu1 }
 0x194   : > { %v1810_v14 = vpop.f32.mrb[0].mxu0  ;;  %v2372_v15 = vadd.f32 %v1818_v13, %v2369_v12  ;;  %v1191_v16 = vpop.f32.mrb[1].mxu1 }
 0x195   : > { %v2375_v17 = vadd.f32 %v1810_v14, %v2369_v12  ;;  %v1159_v18 = vpop.f32.mrb[1].mxu0  ;;  %v2378_v19 = vadd.f32 %v2369_v12, %v1191_v16  ;;  %v1819_v20 = vpop.f32.mrb[2].mxu1 }
 0x196   : > { %v1255_v21 = vmax.f32 %v2372_v15, 0.0  ;;  %v2382_v22 = vadd.f32 %v2369_v12, %v1159_v18  ;;  %v1811_v24 = vpop.f32.mrb[2].mxu0  ;;  %v2385_v25 = vadd.f32 %v1819_v20, %v2369_v12  ;;  %v1194_v27 = vpop.f32.mrb[3].mxu1 }
 0x197   : > { %v1247_v28 = vmax.f32 %v2375_v17, 0.0  ;;  %v1253_v29 = vmax.f32 %v2378_v19, 0.0  ;;  %v2395_v30 = vadd.f32 %v1811_v24, %v2369_v12  ;;  %v1162_v31 = vpop.f32.mrb[3].mxu0  ;;  %v2398_v32 = vadd.f32 %v2369_v12, %v1194_v27  ;;  %v2488_v13 = vpop.permute.xlu0 %1268 }
 0x198   : > { %v1769_v33 = vpack.c.bf16 %v1255_v21, %v1255_v21  ;;  %v1245_v35 = vmax.f32 %v2382_v22, 0.0  ;;  %v1256_v36 = vmax.f32 %v2385_v25, 0.0  ;;  %v2403_v37 = vadd.f32 %v2369_v12, %v1162_v31 }
 0x199   : > { %v1761_v39 = vpack.c.bf16 %v1247_v28, %v1247_v28  ;;  %v1767_v40 = vpack.c.bf16 %v1253_v29, %v1253_v29  ;;  %v1248_v41 = vmax.f32 %v2395_v30, 0.0  ;;  %v1254_v42 = vmax.f32 %v2398_v32, 0.0  ;;  %1307 = vrot.lane.b32.xlu1 %v1247_v28, %s1907_s21 }
 0x19a   : > { %1458 = vst.msk [vmem:[%s2390_s18 + $0x28] sm:$0xf] %vm1447_vm12, %v1769_v33  ;;  %v1759_v43 = vpack.c.bf16 %v1245_v35, %v1245_v35  ;;  %v1770_v44 = vpack.c.bf16 %v1256_v36, %v1256_v36  ;;  %v1246_v0 = vmax.f32 %v2403_v37, 0.0  ;;  %v1273_v14 = vmul.f32 %v2488_v13, %v2375_v17 }
 0x19b   : > { %1450 = vst.msk [vmem:[%s2390_s18 + $0x8] sm:$0xf] %vm1447_vm12, %v1761_v39  ;;  %1456 = vst.msk [vmem:[%s2390_s18 + $0x20] sm:$0xf] %vm1447_vm12, %v1767_v40  ;;  %v1762_v45 = vpack.c.bf16 %v1248_v41, %v1248_v41  ;;  %v1768_v2 = vpack.c.bf16 %v1254_v42, %v1254_v42  ;;  %1309 = vrot.lane.b32.xlu0 %v1248_v41, %s1907_s21  ;;  %v1274_v20 = vmul.f32 %v2488_v13, %v2395_v30 }
 0x19c   : > { %1448 = vst.msk [vmem:[%s2390_s18] sm:$0xf] %vm1447_vm12, %v1759_v43  ;;  %1459 = vst.msk [vmem:[%s2390_s18 + $0x2c] sm:$0xf] %vm1447_vm12, %v1770_v44  ;;  %v1760_v46 = vpack.c.bf16 %v1246_v0, %v1246_v0  ;;  %v1281_v28 = vmul.f32 %v2488_v13, %v2372_v15  ;;  %v1282_v17 = vmul.f32 %v2488_v13, %v2385_v25 }
 0x19d   : > { %1451 = vst.msk [vmem:[%s2390_s18 + $0xc] sm:$0xf] %vm1447_vm12, %v1762_v45  ;;  %1457 = vst.msk [vmem:[%s2390_s18 + $0x24] sm:$0xf] %vm1447_vm12, %v1768_v2  ;;  %1323 = vrot.lane.b32.xlu1 %v1255_v21, %s1907_s21  ;;  %v1271_v41 = vmul.f32 %v2488_v13, %v2382_v22  ;;  %v1272_v25 = vmul.f32 %v2488_v13, %v2403_v37  ;;  %v1279_v22 = vmul.f32 %v2488_v13, %v2378_v19 }
 0x19e   : > { %1449 = vst.msk [vmem:[%s2390_s18 + $0x4] sm:$0xf] %vm1447_vm12, %v1760_v46  ;;  %v1280_v37 = vmul.f32 %v2488_v13, %v2398_v32 }
 0x19f   : > { %1325 = vrot.lane.b32.xlu0 %v1256_v36, %s1907_s21 }
 0x1a1   : > { %1303 = vrot.lane.b32.xlu1 %v1245_v35, %s1907_s21 }
 0x1a3   : > { %1305 = vrot.lane.b32.xlu0 %v1246_v0, %s1907_s21 }
 0x1a5   : > { %1319 = vrot.lane.b32.xlu1 %v1253_v29, %s1907_s21 }
 0x1a7   : > { %1321 = vrot.lane.b32.xlu0 %v1254_v42, %s1907_s21 }
 0x1cf   : > { %v1822_v47 = vpop.f32.mrb[4].mxu1 }
 0x1d0   : > { %v1814_v49 = vpop.f32.mrb[4].mxu0  ;;  %v2433_v50 = vadd.f32 %v1822_v47, %v2369_v12  ;;  %v1207_v61 = vpop.f32.mrb[5].mxu1 }
 0x1d1   : > { %v2436_v52 = vadd.f32 %v1814_v49, %v2369_v12  ;;  %v1175_v1 = vpop.f32.mrb[5].mxu0  ;;  %v2439_v53 = vadd.f32 %v2369_v12, %v1207_v61  ;;  %v1823_v23 = vpop.f32.mrb[6].mxu1 }
 0x1d2   : > { %v1259_v34 = vmax.f32 %v2433_v50, 0.0  ;;  %v2443_v48 = vadd.f32 %v2369_v12, %v1175_v1  ;;  %v1815_v38 = vpop.f32.mrb[6].mxu0  ;;  %v2446_v51 = vadd.f32 %v1823_v23, %v2369_v12  ;;  %v1210_v54 = vpop.f32.mrb[7].mxu1 }
 0x1d3   : > { %v1251_v56 = vmax.f32 %v2436_v52, 0.0  ;;  %v1257_v6 = vmax.f32 %v2439_v53, 0.0  ;;  %v2451_v57 = vadd.f32 %v1815_v38, %v2369_v12  ;;  %v1178_v26 = vpop.f32.mrb[7].mxu0  ;;  %v2454_v58 = vadd.f32 %v2369_v12, %v1210_v54 }
 0x1d4   : > { %v1773_v8 = vpack.c.bf16 %v1259_v34, %v1259_v34  ;;  %v1249_v59 = vmax.f32 %v2443_v48, 0.0  ;;  %v1260_v60 = vmax.f32 %v2446_v51, 0.0  ;;  %v2459_v62 = vadd.f32 %v2369_v12, %v1178_v26 }
 0x1d5   : > { %v1765_v63 = vpack.c.bf16 %v1251_v56, %v1251_v56  ;;  %v1771_v3 = vpack.c.bf16 %v1257_v6, %v1257_v6  ;;  %v1252_v7 = vmax.f32 %v2451_v57, 0.0  ;;  %v1258_v55 = vmax.f32 %v2454_v58, 0.0  ;;  %1315 = vrot.lane.b32.xlu1 %v1251_v56, %s1907_s21 }
 0x1d6   : > { %1462 = vst.msk [vmem:[%s2390_s18 + $0x38] sm:$0xf] %vm1447_vm12, %v1773_v8  ;;  %v1763_v9 = vpack.c.bf16 %v1249_v59, %v1249_v59  ;;  %v1774_v10 = vpack.c.bf16 %v1260_v60, %v1260_v60  ;;  %v1250_v4 = vmax.f32 %v2459_v62, 0.0  ;;  %v1277_v26 = vmul.f32 %v2488_v13, %v2436_v52 }
 0x1d7   : > { %1454 = vst.msk [vmem:[%s2390_s18 + $0x18] sm:$0xf] %vm1447_vm12, %v1765_v63  ;;  %1460 = vst.msk [vmem:[%s2390_s18 + $0x30] sm:$0xf] %vm1447_vm12, %v1771_v3  ;;  %v1766_v5 = vpack.c.bf16 %v1252_v7, %v1252_v7  ;;  %v1772_v11 = vpack.c.bf16 %v1258_v55, %v1258_v55  ;;  %1317 = vrot.lane.b32.xlu0 %v1252_v7, %s1907_s21  ;;  %v1275_v7 = vmul.f32 %v2488_v13, %v2443_v48 }
 0x1d8   : > { %1452 = vst.msk [vmem:[%s2390_s18 + $0x10] sm:$0xf] %vm1447_vm12, %v1763_v9  ;;  %1463 = vst.msk [vmem:[%s2390_s18 + $0x3c] sm:$0xf] %vm1447_vm12, %v1774_v10  ;;  %v1764_v12 = vpack.c.bf16 %v1250_v4, %v1250_v4  ;;  %v1276_v52 = vmul.f32 %v2488_v13, %v2459_v62  ;;  %v1284_v62 = vmul.f32 %v2488_v13, %v2454_v58 }
 0x1d9   : > { %1455 = vst.msk [vmem:[%s2390_s18 + $0x1c] sm:$0xf] %vm1447_vm12, %v1766_v5  ;;  %1461 = vst.msk [vmem:[%s2390_s18 + $0x34] sm:$0xf] %vm1447_vm12, %v1772_v11  ;;  %1311 = vrot.lane.b32.xlu1 %v1249_v59, %s1907_s21  ;;  %v1278_v59 = vmul.f32 %v2488_v13, %v2451_v57  ;;  %v1286_v58 = vmul.f32 %v2488_v13, %v2446_v51 }
 0x1da   : > { %1453 = vst.msk [vmem:[%s2390_s18 + $0x14] sm:$0xf] %vm1447_vm12, %v1764_v12 }
 0x1db   : > { %1313 = vrot.lane.b32.xlu0 %v1250_v4, %s1907_s21 }
 0x1dd   : > { %1327 = vrot.lane.b32.xlu1 %v1257_v6, %s1907_s21 }
 0x1df   : > { %1329 = vrot.lane.b32.xlu0 %v1258_v55, %s1907_s21 }
 0x1e1   : > { %1331 = vrot.lane.b32.xlu1 %v1259_v34, %s1907_s21 }
 0x1e3   : > { %1333 = vrot.lane.b32.xlu0 %v1260_v60, %s1907_s21 }
 0x20b   : > { %v1308_v16 = vpop.permute.xlu1 %1307 }
 0x20c   : > { %v1353_v18 = vadd.f32 %v1308_v16, %v1273_v14  ;;  %v1283_v14 = vmul.f32 %v2488_v13, %v2439_v53  ;;  %v1285_v53 = vmul.f32 %v2488_v13, %v2433_v50 }
 0x20d   : > { %v1310_v21 = vpop.permute.xlu0 %1309 }
 0x20e   : > { %v1369_v24 = vmax.f32 %v1353_v18, 0.0  ;;  %v1354_v27 = vadd.f32 %v1310_v21, %v1274_v20 }
 0x20f   : > { %v1324_v29 = vpop.permute.xlu1 %1323 }
 0x210   : > { %v1777_v31 = vpack.c.bf16 %v1369_v24, %v1369_v24  ;;  %v1370_v33 = vmax.f32 %v1354_v27, 0.0  ;;  %v1361_v35 = vadd.f32 %v1324_v29, %v1281_v28 }
 0x211   : > { %v1326_v36 = vpop.permute.xlu0 %1325 }
 0x212   : > { %1531 = vst.msk [vmem:[%s2390_s18 + $0x8] sm:$0xf] %vm1528_vm13, %v1777_v31  ;;  %v1778_v30 = vpack.c.bf16 %v1370_v33, %v1370_v33  ;;  %v1377_v39 = vmax.f32 %v1361_v35, 0.0  ;;  %v1362_v40 = vadd.f32 %v1326_v36, %v1282_v17 }
 0x213   : > { %v1304_v15 = vpop.permute.xlu1 %1303 }
 0x214   : > { %1532 = vst.msk [vmem:[%s2390_s18 + $0xc] sm:$0xf] %vm1528_vm13, %v1778_v30  ;;  %v1785_v42 = vpack.c.bf16 %v1377_v39, %v1377_v39  ;;  %v1378_v43 = vmax.f32 %v1362_v40, 0.0  ;;  %v1351_v44 = vadd.f32 %v1304_v15, %v1271_v41 }
 0x215   : > { %v1306_v0 = vpop.permute.xlu0 %1305 }
 0x216   : > { %1539 = vst.msk [vmem:[%s2390_s18 + $0x28] sm:$0xf] %vm1528_vm13, %v1785_v42  ;;  %v1786_v45 = vpack.c.bf16 %v1378_v43, %v1378_v43  ;;  %v1367_v2 = vmax.f32 %v1351_v44, 0.0  ;;  %v1352_v46 = vadd.f32 %v1306_v0, %v1272_v25 }
 0x217   : > { %v1320_v47 = vpop.permute.xlu1 %1319 }
 0x218   : > { %1540 = vst.msk [vmem:[%s2390_s18 + $0x2c] sm:$0xf] %vm1528_vm13, %v1786_v45  ;;  %v1775_v49 = vpack.c.bf16 %v1367_v2, %v1367_v2  ;;  %v1368_v61 = vmax.f32 %v1352_v46, 0.0  ;;  %v1359_v1 = vadd.f32 %v1320_v47, %v1279_v22 }
 0x219   : > { %v1322_v23 = vpop.permute.xlu0 %1321 }
 0x21a   : > { %1529 = vst.msk [vmem:[%s2390_s18] sm:$0xf] %vm1528_vm13, %v1775_v49  ;;  %v1776_v34 = vpack.c.bf16 %v1368_v61, %v1368_v61  ;;  %v1375_v38 = vmax.f32 %v1359_v1, 0.0  ;;  %v1360_v54 = vadd.f32 %v1322_v23, %v1280_v37 }
 0x21c   : > { %1530 = vst.msk [vmem:[%s2390_s18 + $0x4] sm:$0xf] %vm1528_vm13, %v1776_v34  ;;  %v1783_v56 = vpack.c.bf16 %v1375_v38, %v1375_v38  ;;  %v1376_v19 = vmax.f32 %v1360_v54, 0.0 }
 0x21e   : > { %1537 = vst.msk [vmem:[%s2390_s18 + $0x20] sm:$0xf] %vm1528_vm13, %v1783_v56  ;;  %v1784_v6 = vpack.c.bf16 %v1376_v19, %v1376_v19 }
 0x220   : > { %1538 = vst.msk [vmem:[%s2390_s18 + $0x24] sm:$0xf] %vm1528_vm13, %v1784_v6 }
 0x247   : > { %v1316_v32 = vpop.permute.xlu1 %1315 }
 0x248   : > { %v1357_v8 = vadd.f32 %v1316_v32, %v1277_v26 }
 0x249   : > { %v1318_v60 = vpop.permute.xlu0 %1317 }
 0x24a   : > { %v1373_v63 = vmax.f32 %v1357_v8, 0.0  ;;  %v1358_v3 = vadd.f32 %v1318_v60, %v1278_v59 }
 0x24b   : > { %v1312_v55 = vpop.permute.xlu1 %1311 }
 0x24c   : > { %v1781_v9 = vpack.c.bf16 %v1373_v63, %v1373_v63  ;;  %v1374_v10 = vmax.f32 %v1358_v3, 0.0  ;;  %v1355_v4 = vadd.f32 %v1312_v55, %v1275_v7 }
 0x24d   : > { %v1314_v5 = vpop.permute.xlu0 %1313 }
 0x24e   : > { %1535 = vst.msk [vmem:[%s2390_s18 + $0x18] sm:$0xf] %vm1528_vm13, %v1781_v9  ;;  %v1782_v11 = vpack.c.bf16 %v1374_v10, %v1374_v10  ;;  %v1371_v57 = vmax.f32 %v1355_v4, 0.0  ;;  %v1356_v12 = vadd.f32 %v1314_v5, %v1276_v52 }
 0x24f   : > { %v1328_v16 = vpop.permute.xlu1 %1327 }
 0x250   : > { %1536 = vst.msk [vmem:[%s2390_s18 + $0x1c] sm:$0xf] %vm1528_vm13, %v1782_v11  ;;  %v1779_v48 = vpack.c.bf16 %v1371_v57, %v1371_v57  ;;  %v1372_v18 = vmax.f32 %v1356_v12, 0.0  ;;  %v1363_v20 = vadd.f32 %v1328_v16, %v1283_v14 }
 0x251   : > { %v1330_v21 = vpop.permute.xlu0 %1329 }
 0x252   : > { %1533 = vst.msk [vmem:[%s2390_s18 + $0x10] sm:$0xf] %vm1528_vm13, %v1779_v48  ;;  %v1780_v24 = vpack.c.bf16 %v1372_v18, %v1372_v18  ;;  %v1379_v27 = vmax.f32 %v1363_v20, 0.0  ;;  %v1364_v28 = vadd.f32 %v1330_v21, %v1284_v62 }
 0x253   : > { %v1332_v29 = vpop.permute.xlu1 %1331 }
 0x254   : > { %1534 = vst.msk [vmem:[%s2390_s18 + $0x14] sm:$0xf] %vm1528_vm13, %v1780_v24  ;;  %v1787_v31 = vpack.c.bf16 %v1379_v27, %v1379_v27  ;;  %v1380_v33 = vmax.f32 %v1364_v28, 0.0  ;;  %v1365_v35 = vadd.f32 %v1332_v29, %v1285_v53 }
 0x255   : > { %v1334_v17 = vpop.permute.xlu0 %1333 }
 0x256   : > { %1541 = vst.msk [vmem:[%s2390_s18 + $0x30] sm:$0xf] %vm1528_vm13, %v1787_v31  ;;  %v1788_v36 = vpack.c.bf16 %v1380_v33, %v1380_v33  ;;  %v1381_v30 = vmax.f32 %v1365_v35, 0.0  ;;  %v1366_v39 = vadd.f32 %v1334_v17, %v1286_v58 }
 0x258   : > { %1542 = vst.msk [vmem:[%s2390_s18 + $0x34] sm:$0xf] %vm1528_vm13, %v1788_v36  ;;  %v1789_v40 = vpack.c.bf16 %v1381_v30, %v1381_v30  ;;  %v1382_v50 = vmax.f32 %v1366_v39, 0.0 }
 0x25a   : > { %1543 = vst.msk [vmem:[%s2390_s18 + $0x38] sm:$0xf] %vm1528_vm13, %v1789_v40  ;;  %v1790_v41 = vpack.c.bf16 %v1382_v50, %v1382_v50 }
 0x25c   : > { %1544 = vst.msk [vmem:[%s2390_s18 + $0x3c] sm:$0xf] %vm1528_vm13, %v1790_v41 }
 0x25d PF: > { %s14_s15 = sadd.s32 1, %s1905_s15  }
 0x25e   : > { %p11_p4 = scmp.ge.s32.totalorder %s14_s15, 4  }
 0x260   :  { %13 = sbr.rel (!%p11_p4) target bundleno = 1 (0x1), region = 66 }

// kernel: two_stream_attention_forward.5
= control target key start
LH: loop header
LB: loop body
LE: loop exit
PB: predicated region body
PF: predicated region fallthrough
CT: control target
= control target key end

     0   :  { %s1335_s14 = smov 0   ;;  %s2075_s0 = inlined_call_operand.vmem [shape: bf16[18,18,16], index: 0, kind: input, shape index: {}]   ;;  %s2076_s1 = inlined_call_operand.vmem [shape: f32[9,16], index: 1, kind: input, shape index: {}]   ;;  %s2077_s2 = inlined_call_operand.<no memory space> [shape: f32[1,1], index: 2, kind: input, shape index: {}]   ;;  %s2078_s3 = inlined_call_operand.vmem [shape: f32[16,12], index: 3, kind: output, shape index: {}]  }
   0x1   :  { %v8_v0 = vstv %s2077_s2 }
   0x2   :  { %9 = vst [vmem:[#allocation2] sm:$0x1] %v8_v0 }
   0x3 LB: > { %s1341_s15 = sadd.s32 4294967295, %s1310_s14   ;;  %p1172_p0 = scmp.ge.s32.totalorder %s1310_s14, 1  ;;  %s1310_s14 = sphi %s1335_s14, %s15_s14  }
   0x4   : > { %p124_p1 = scmp.lt.s32.totalorder %s1310_s14, 3 }
   0x6   : > { %p125_p2 = pnand %p1172_p0, %p124_p1 }
   0x7   : > { %s1224_s16 = smul.u32 (!%p125_p2), 96, %s1341_s15  ;;  %v1349_v1 = vld [vmem:[%s2076_s1] ss:$0 sm:$0xff] (!%p125_p2)  ;;  %v1354_v2 = vld [vmem:[%s2076_s1 + $0x1] ss:$0 sm:$0xff] (!%p125_p2)  ;;  %vm248_vm0 = vcmask (!%p125_p2), 1046528  }
   0x8   : > { %128 = sbr.rel (%p125_p2) target bundleno = 741 (0x2e5), region = 32  ;;  %v1364_v3 = vld [vmem:[%s2076_s1 + $0x2] ss:$0 sm:$0xff] (!%p125_p2)  ;;  %v1369_v4 = vld [vmem:[%s2076_s1 + $0x4] ss:$0 sm:$0xff] (!%p125_p2)  ;;  %vm342_vm1 = vcmask (!%p125_p2), 1045504  }
   0x9   : > { %s1359_s22 = scalar_lea.vmem (!%p125_p2), %s2075_s0, %s1224_s16  ;;  %v1374_v5 = vld [vmem:[%s2076_s1 + $0x5] ss:$0 sm:$0xff] (!%p125_p2)  ;;  %v1385_v11 = vld [vmem:[%s2076_s1 + $0x7] ss:$0 sm:$0xff] (!%p125_p2)  ;;  %v1396_v16 = vld [vmem:[%s2076_s1 + $0x3] ss:$0 sm:$0xff] (!%p125_p2) }
   0xa   : > { %v145_v6 = vld [vmem:[%s1359_s22 + $0xc] sm:$0xff] (!%p125_p2)   ;;  %v1276_v7 = vld [vmem:[%s1359_s22 + $0x18] sm:$0xff] (!%p125_p2)   ;;  %v1379_v8 = vld [vmem:[%s1359_s22 + $0x24] sm:$0xff] (!%p125_p2)   ;;  %vm921_vm2 = vcmask (!%p125_p2), 128000   ;;  %vm917_vm3 = vcmask (!%p125_p2), 130050   ;;  %vm1014_vm4 = vcmask (!%p125_p2), 113712  }
   0xb   : > { %v161_v9 = vunpack.c.h.bf16 (!%p125_p2), %v145_v6  ;;  %v681_v10 = vunpack.c.h.bf16 (!%p125_p2), %v1379_v8  ;;  %v1226_v12 = vld [vmem:[%s1359_s22] sm:$0xff] (!%p125_p2)   ;;  %v1389_v13 = vld [vmem:[%s1359_s22 + $0x10] ss:$24 sps:$4 sm:$0xff] (!%p125_p2)   ;;  %v1391_v14 = vunpack.c.l.bf16 (!%p125_p2), %v1276_v7  ;;  %v1244_v15 = vunpack.c.h.bf16 (!%p125_p2), %v1276_v7  ;;  %s1173_s11 = sshll.u32 (!%p125_p2), %s1341_s15, 3  ;;  %p1221_p3 = scmp.ne.s32.totalorder (!%p125_p2), %s1341_s15, 1 }
   0xc   : > { %v1401_v17 = vld [vmem:[%s2076_s1 + $0x8] ss:$0 sm:$0xff] (!%p125_p2)  ;;  %v1228_v18 = vunpack.c.h.bf16 (!%p125_p2), %v1226_v12  ;;  %v420_v19 = vunpack.c.l.bf16 (!%p125_p2), %v1389_v13  ;;  %v1414_v23 = vld [vmem:[%s2076_s1 + $0x6] ss:$0 sm:$0xff] (!%p125_p2)  ;;  %v1416_v24 = vunpack.c.l.bf16 (!%p125_p2), %v1226_v12  ;;  %v1427_v28 = vunpack.c.l.bf16 (!%p125_p2), %v145_v6  ;;  %v967_v37 = vld [vmem:[#allocation2] sm:$0x1] (!%p125_p2)  ;;  %s1093_s16 = scalar_lea.vmem (!%p125_p2), %s2078_s3, %s1173_s11 }
   0xd   : > { %v182_v20 = vmul.f32 (!%p125_p2), %v1349_v1, %v161_v9  ;;  %v1406_v21 = vmul.f32 (!%p125_p2), %v1354_v2, %v161_v9  ;;  %v1409_v22 = vmul.f32 (!%p125_p2), %v1364_v3, %v161_v9  ;;  %v1419_v25 = vmul.f32 (!%p125_p2), %v1244_v15, %v1369_v4  ;;  %1284 = vpush (!%p125_p2), %v967_v37  ;;  %v1466_v50 = vld [vmem:[%s1359_s22 + $0x24] sm:$0xff] (!%p125_p2)   ;;  %v1281_v59 = vld [vmem:[%s1359_s22 + $0x30] sm:$0xff] (!%p125_p2)  }
   0xe   : > { %v1422_v26 = vmul.f32 (!%p125_p2), %v1244_v15, %v1374_v5  ;;  %v1425_v27 = vmul.f32 (!%p125_p2), %v1385_v11, %v681_v10  ;;  %v443_v31 = vmul.f32 (!%p125_p2), %v1244_v15, %v1396_v16  ;;  %v1433_v32 = vmul.f32 (!%p125_p2), %v1401_v17, %v681_v10 }
   0xf   : > { %v2084_v29 = vrot.slane %v1406_v21, 1  ;;  %v2081_v30 = vrot.slane %v1409_v22, 2  ;;  %v2080_v33 = vrot.slane %v1419_v25, 1  ;;  %v702_v34 = vmul.f32 %v1414_v23, %v681_v10 }
  0x10   : > { %v180_v35 = vmul.f32 %v1228_v18, %v1349_v1  ;;  %v1439_v36 = vmul.f32 %v1228_v18, %v1354_v2  ;;  %v2079_v39 = vrot.slane %v1422_v26, 2  ;;  %v2083_v40 = vrot.slane %v1425_v27, 1 }
  0x11   : > { %v292_v38 = vadd.f32 %v2084_v29, %v182_v20  ;;  %v1446_v41 = vmul.f32 %v1228_v18, %v1364_v3  ;;  %v2082_v42 = vrot.slane %v1433_v32, 2  ;;  %v1451_v44 = vmul.f32 %v1369_v4, %v420_v19 }
  0x12   : > { %v250_v43 = vrot.slane %v1439_v36, 1  ;;  %v1454_v45 = vmul.f32 %v1374_v5, %v420_v19  ;;  %v1460_v48 = vmul.f32 %v1244_v15, %v1385_v11  ;;  %v1463_v49 = vmul.f32 %v1244_v15, %v1401_v17 }
  0x13   : > { %v386_v46 = vadd.f32 %v2081_v30, %v292_v38  ;;  %v344_v47 = vrot.slane %v1446_v41, 2  ;;  %v441_v52 = vmul.f32 %v1396_v16, %v420_v19  ;;  %v510_v53 = vrot.slane %v1451_v44, 1 }
  0x14   : > { %v290_v51 = vadd.f32 %v250_v43, %v180_v35  ;;  %v700_v54 = vmul.f32 %v1244_v15, %v1414_v23  ;;  %v603_v56 = vrot.slane %v1454_v45, 2  ;;  %v184_v57 = vmul.f32 %v1244_v15, %v1349_v1 }
  0x15   : > { %v459_v55 = vadd.f32 %v443_v31, %v386_v46  ;;  %v1474_v58 = vmul.f32 %v1244_v15, %v1354_v2  ;;  %v769_v61 = vrot.slane %v1460_v48, 1  ;;  %v1479_v62 = vmul.f32 %v1244_v15, %v1364_v3 }
  0x16   : > { %v384_v60 = vadd.f32 %v344_v47, %v290_v51  ;;  %v424_v63 = vunpack.c.h.bf16 %v1466_v50  ;;  %v862_v6 = vrot.slane %v1463_v49, 2  ;;  %v1486_v9 = vunpack.c.l.bf16 %v1281_v59 }
  0x17   : > { %v552_v0 = vadd.f32 %v2080_v33, %v459_v55  ;;  %v256_v7 = vrot.slane %v1474_v58, 1  ;;  %v350_v12 = vrot.slane %v1479_v62, 2  ;;  %v1492_v19 = vunpack.c.h.bf16 %v1281_v59 }
  0x18   : > { %v457_v10 = vadd.f32 %v441_v52, %v384_v60  ;;  %v1490_v18 = vmul.f32 %v1369_v4, %v424_v63  ;;  %v445_v31 = vmul.f32 %v1396_v16, %v424_v63  ;;  %v1500_v35 = vmul.f32 %v1374_v5, %v424_v63 }
  0x19   : > { %v645_v15 = vadd.f32 %v2079_v39, %v552_v0  ;;  %v294_v20 = vadd.f32 %v256_v7, %v184_v57  ;;  %v704_v37 = vmul.f32 %v1492_v19, %v1414_v23  ;;  %v1508_v38 = vmul.f32 %v1492_v19, %v1385_v11 }
  0x1a   : > { %v550_v36 = vadd.f32 %v510_v53, %v457_v10  ;;  %v179_v41 = vmul.f32 %v1416_v24, %v1349_v1  ;;  %v516_v52 = vrot.slane %v1490_v18, 1  ;;  %v216_v55 = vmul.f32 %v1416_v24, %v1354_v2 }
  0x1b   : > { %v718_v46 = vadd.f32 %v702_v34, %v645_v15  ;;  %v388_v51 = vadd.f32 %v350_v12, %v294_v20  ;;  %v609_v59 = vrot.slane %v1500_v35, 2  ;;  %v1522_v60 = vmul.f32 %v1492_v19, %v1401_v17 }
  0x1c   : > { %v643_v57 = vadd.f32 %v603_v56, %v550_v36  ;;  %v310_v34 = vmul.f32 %v1416_v24, %v1364_v3  ;;  %v775_v10 = vrot.slane %v1508_v38, 1  ;;  %v249_v15 = vrot.slane %v216_v55, 1 }
  0x1d   : > { %v811_v63 = vadd.f32 %v2083_v40, %v718_v46  ;;  %v461_v0 = vadd.f32 %v445_v31, %v388_v51  ;;  %v477_v36 = vmul.f32 %v1369_v4, %v1427_v28  ;;  %v570_v33 = vmul.f32 %v1374_v5, %v1427_v28 }
  0x1e   : > { %v716_v20 = vadd.f32 %v700_v54, %v643_v57  ;;  %v343_v39 = vrot.slane %v310_v34, 2  ;;  %v251_v46 = vsel %vm248_vm0, %v249_v15, %v250_v43  ;;  %v440_v31 = vmul.f32 %v1396_v16, %v1427_v28 }
  0x1f   : > { %v904_v30 = vadd.f32 %v2082_v42, %v811_v63  ;;  %v554_v24 = vadd.f32 %v516_v52, %v461_v0  ;;  %v289_v51 = vadd.f32 %v251_v46, %v179_v41  ;;  %v509_v57 = vrot.slane %v477_v36, 1 }
  0x20   : > { %v809_v54 = vadd.f32 %v769_v61, %v716_v20  ;;  %v345_v55 = vsel %vm342_vm1, %v343_v39, %v344_v47  ;;  %v602_v42 = vrot.slane %v570_v33, 2  ;;  %v736_v43 = vmul.f32 %v1391_v14, %v1385_v11 }
  0x21   : > { %v928_v34 = vsel %vm921_vm2, %v904_v30, 0.0  ;;  %v647_v63 = vadd.f32 %v609_v59, %v554_v24  ;;  %v868_v0 = vrot.slane %v1522_v60, 2  ;;  %v383_v41 = vadd.f32 %v345_v55, %v289_v51 }
  0x22   : > { %929 = vadd.xlane.f32.xlu1 %v928_v34  ;;  %v902_v28 = vadd.f32 %v862_v6, %v809_v54  ;;  %v829_v39 = vmul.f32 %v1391_v14, %v1401_v17  ;;  %v511_v30 = vsel %vm248_vm0, %v509_v57, %v510_v53  ;;  %v699_v33 = vmul.f32 %v1391_v14, %v1414_v23  ;;  %v1561_v54 = vld [vmem:[%s1359_s22 + $0x3c] sm:$0xff]  }
  0x23   : > { %v720_v47 = vadd.f32 %v704_v37, %v647_v63  ;;  %v165_v15 = vunpack.c.h.bf16 %v1389_v13  ;;  %v456_v36 = vadd.f32 %v440_v31, %v383_v41  ;;  %v768_v24 = vrot.slane %v736_v43, 1 }
  0x24   : > { %v922_v20 = vsel %vm921_vm2, %v902_v28, 0.0  ;;  %v861_v46 = vrot.slane %v829_v39, 2  ;;  %v604_v44 = vsel %vm342_vm1, %v602_v42, %v603_v56  ;;  %v447_v55 = vmul.f32 %v1492_v19, %v1396_v16 }
  0x25   : > { %923 = vadd.xlane.f32.xlu0 %v922_v20  ;;  %v813_v37 = vadd.f32 %v775_v10, %v720_v47  ;;  %v186_v53 = vmul.f32 %v1349_v1, %v165_v15  ;;  %v1570_v13 = vmul.f32 %v1354_v2, %v165_v15  ;;  %v549_v51 = vadd.f32 %v511_v30, %v456_v36 }
  0x26   : > { %v1573_v31 = vmul.f32 %v1364_v3, %v165_v15  ;;  %v1579_v57 = vmul.f32 %v1492_v19, %v1369_v4  ;;  %v1586_v56 = vmul.f32 %v1492_v19, %v1374_v5  ;;  %v685_v34 = vunpack.c.h.bf16 %v1561_v54 }
  0x27   : > { %v906_v42 = vadd.f32 %v868_v0, %v813_v37  ;;  %v259_v45 = vrot.slane %v1570_v13, 1  ;;  %v642_v63 = vadd.f32 %v604_v44, %v549_v51  ;;  %v770_v43 = vsel %vm248_vm0, %v768_v24, %v769_v61 }
  0x28   : > { %v863_v28 = vsel %vm342_vm1, %v861_v46, %v862_v6  ;;  %v353_v41 = vrot.slane %v1573_v31, 2  ;;  %v519_v30 = vrot.slane %v1579_v57, 1  ;;  %v183_v15 = vmul.f32 %v1391_v14, %v1349_v1 }
  0x29   : > { %v934_v39 = vsel %vm921_vm2, %v906_v42, 0.0  ;;  %v296_v47 = vadd.f32 %v259_v45, %v186_v53  ;;  %v715_v48 = vadd.f32 %v699_v33, %v642_v63  ;;  %v612_v61 = vrot.slane %v1586_v56, 2 }
  0x2a   : > { %935 = vadd.xlane.f32.xlu1 %v934_v39  ;;  %v706_v49 = vmul.f32 %v1414_v23, %v685_v34  ;;  %v220_v6 = vmul.f32 %v1391_v14, %v1354_v2  ;;  %v1609_v36 = vmul.f32 %v1385_v11, %v685_v34  ;;  %v314_v24 = vmul.f32 %v1391_v14, %v1364_v3 }
  0x2b   : > { %v390_v20 = vadd.f32 %v353_v41, %v296_v47  ;;  %v423_v46 = vunpack.c.l.bf16 %v1379_v8  ;;  %v808_v37 = vadd.f32 %v770_v43, %v715_v48  ;;  %v1615_v33 = vmul.f32 %v1401_v17, %v685_v34 }
  0x2c   : > { %v255_v44 = vrot.slane %v220_v6, 1  ;;  %v703_v53 = vmul.f32 %v1486_v9, %v1414_v23  ;;  %v349_v42 = vrot.slane %v314_v24, 2  ;;  %v740_v34 = vmul.f32 %v1486_v9, %v1385_v11 }
  0x2d   : > { %v463_v51 = vadd.f32 %v447_v55, %v390_v20  ;;  %v444_v63 = vmul.f32 %v1396_v16, %v423_v46  ;;  %v481_v39 = vmul.f32 %v1369_v4, %v423_v46  ;;  %v901_v47 = vadd.f32 %v863_v28, %v808_v37 }
  0x2e   : > { %v257_v8 = vsel %vm248_vm0, %v255_v44, %v256_v7  ;;  %v574_v43 = vmul.f32 %v1374_v5, %v423_v46  ;;  %v351_v6 = vsel %vm342_vm1, %v349_v42, %v350_v12  ;;  %v774_v24 = vrot.slane %v740_v34, 1  ;;  %v1636_v46 = vld [vmem:[%s1359_s22 + $0x3c] sm:$0xff]  }
  0x2f   : > { %v556_v48 = vadd.f32 %v519_v30, %v463_v51  ;;  %v293_v55 = vadd.f32 %v257_v8, %v183_v15  ;;  %v515_v20 = vrot.slane %v481_v39, 1  ;;  %v918_v28 = vsel %vm917_vm3, %v901_v47, 0.0  ;;  %v1282_v47 = vld [vmem:[%s1359_s22 + $0x48] sm:$0xff]  }
  0x30   : > { %v608_v58 = vrot.slane %v574_v43, 2  ;;  %v833_v7 = vmul.f32 %v1486_v9, %v1401_v17  ;;  %919 = vadd.xlane.f32.xlu0 %v918_v28  ;;  %v778_v15 = vrot.slane %v1609_v36, 1  ;;  %v871_v62 = vrot.slane %v1615_v33, 2 }
  0x31   : > { %v649_v37 = vadd.f32 %v612_v61, %v556_v48  ;;  %v387_v12 = vadd.f32 %v351_v6, %v293_v55  ;;  %v517_v44 = vsel %vm248_vm0, %v515_v20, %v516_v52  ;;  %v188_v42 = vmul.f32 %v1492_v19, %v1349_v1 }
  0x32   : > { %v867_v51 = vrot.slane %v833_v7, 2  ;;  %v1649_v39 = vmul.f32 %v1492_v19, %v1354_v2  ;;  %v1654_v34 = vmul.f32 %v1492_v19, %v1364_v3  ;;  %v428_v48 = vunpack.c.h.bf16 %v1636_v46 }
  0x33   : > { %v722_v8 = vadd.f32 %v706_v49, %v649_v37  ;;  %v460_v43 = vadd.f32 %v444_v63, %v387_v12  ;;  %v610_v18 = vsel %vm342_vm1, %v608_v58, %v609_v59  ;;  %v776_v52 = vsel %vm248_vm0, %v774_v24, %v775_v10 }
  0x34   : > { %v869_v55 = vsel %vm342_vm1, %v867_v51, %v868_v0  ;;  %v262_v49 = vrot.slane %v1649_v39, 1  ;;  %v356_v6 = vrot.slane %v1654_v34, 2  ;;  %v1670_v20 = vunpack.c.h.bf16 %v1282_v47 }
  0x35   : > { %v815_v19 = vadd.f32 %v778_v15, %v722_v8  ;;  %v553_v63 = vadd.f32 %v517_v44, %v460_v43  ;;  %v449_v38 = vmul.f32 %v1396_v16, %v428_v48  ;;  %v1676_v59 = vmul.f32 %v1369_v4, %v428_v48 }
  0x36   : > { %v298_v35 = vadd.f32 %v262_v49, %v188_v42  ;;  %v1679_v60 = vmul.f32 %v1374_v5, %v428_v48  ;;  %v1683_v28 = vunpack.c.l.bf16 %v1282_v47  ;;  %v1687_v58 = vmul.f32 %v1670_v20, %v1385_v11 }
  0x37   : > { %v908_v10 = vadd.f32 %v871_v62, %v815_v19  ;;  %v646_v0 = vadd.f32 %v610_v18, %v553_v63  ;;  %v522_v7 = vrot.slane %v1676_v59, 1  ;;  %v708_v37 = vmul.f32 %v1670_v20, %v1414_v23  ;;  %v1705_v19 = vld [vmem:[%s1359_s22 + $0x3c] sm:$0xff]  }
  0x38   : > { %v392_v24 = vadd.f32 %v356_v6, %v298_v35  ;;  %v164_v12 = vunpack.c.l.bf16 %v1466_v50  ;;  %v615_v42 = vrot.slane %v1679_v60, 2  ;;  %v1699_v47 = vmul.f32 %v1670_v20, %v1401_v17 }
  0x39   : > { %v940_v44 = vsel %vm921_vm2, %v908_v10, 0.0  ;;  %v719_v51 = vadd.f32 %v703_v53, %v646_v0  ;;  %v781_v43 = vrot.slane %v1687_v58, 1  ;;  %v483_v53 = vmul.f32 %v1486_v9, %v1369_v4 }
  0x3a   : > { %941 = vadd.xlane.f32.xlu1 %v940_v44  ;;  %v465_v8 = vadd.f32 %v449_v38, %v392_v24  ;;  %v222_v48 = vmul.f32 %v1354_v2, %v164_v12  ;;  %v316_v18 = vmul.f32 %v1364_v3, %v164_v12  ;;  %v185_v63 = vmul.f32 %v1349_v1, %v164_v12 }
  0x3b   : > { %v812_v50 = vadd.f32 %v776_v52, %v719_v51  ;;  %v576_v35 = vmul.f32 %v1486_v9, %v1374_v5  ;;  %v684_v24 = vunpack.c.l.bf16 %v1561_v54  ;;  %v874_v40 = vrot.slane %v1699_v47, 2 }
  0x3c   : > { %v558_v38 = vadd.f32 %v522_v7, %v465_v8  ;;  %v258_v10 = vrot.slane %v222_v48, 1  ;;  %v352_v0 = vrot.slane %v316_v18, 2  ;;  %v518_v29 = vrot.slane %v483_v53, 1 }
  0x3d   : > { %v905_v44 = vadd.f32 %v869_v55, %v812_v50  ;;  %v169_v52 = vunpack.c.h.bf16 %v1705_v19  ;;  %v446_v54 = vmul.f32 %v1486_v9, %v1396_v16  ;;  %v611_v18 = vrot.slane %v576_v35, 2 }
  0x3e   : > { %v651_v12 = vadd.f32 %v615_v42, %v558_v38  ;;  %v260_v51 = vsel %vm248_vm0, %v258_v10, %v259_v45  ;;  %v354_v8 = vsel %vm342_vm1, %v352_v0, %v353_v41  ;;  %v705_v50 = vmul.f32 %v1414_v23, %v684_v24  ;;  %s1285_s10 = spop %1284 }
  0x3f   : > { %v931_v55 = vsel %vm917_vm3, %v905_v44, 0.0  ;;  %v295_v48 = vadd.f32 %v260_v51, %v185_v63  ;;  %v520_v13 = vsel %vm248_vm0, %v518_v29, %v519_v30  ;;  %v742_v31 = vmul.f32 %v1385_v11, %v684_v24  ;;  %v1748_v30 = vld [vmem:[%s1359_s22 + $0x54] sm:$0xff]  }
  0x40   : > { %932 = vadd.xlane.f32.xlu0 %v931_v55  ;;  %v724_v53 = vadd.f32 %v708_v37, %v651_v12  ;;  %v835_v45 = vmul.f32 %v1401_v17, %v684_v24  ;;  %v190_v38 = vmul.f32 %v1349_v1, %v169_v52  ;;  %v1736_v10 = vmul.f32 %v1354_v2, %v169_v52 }
  0x41   : > { %v389_v41 = vadd.f32 %v354_v8, %v295_v48  ;;  %v1739_v63 = vmul.f32 %v1364_v3, %v169_v52  ;;  %v777_v35 = vrot.slane %v742_v31, 1  ;;  %v1745_v29 = vmul.f32 %v1670_v20, %v1369_v4 }
  0x42   : > { %v817_v37 = vadd.f32 %v781_v43, %v724_v53  ;;  %v870_v57 = vrot.slane %v835_v45, 2  ;;  %v613_v24 = vsel %vm342_vm1, %v611_v18, %v612_v61  ;;  %v265_v44 = vrot.slane %v1736_v10, 1 }
  0x43   : > { %v462_v0 = vadd.f32 %v446_v54, %v389_v41  ;;  %v359_v52 = vrot.slane %v1739_v63, 2  ;;  %v779_v51 = vsel %vm248_vm0, %v777_v35, %v778_v15  ;;  %v451_v8 = vmul.f32 %v1670_v20, %v1396_v16 }
  0x44   : > { %v910_v12 = vadd.f32 %v874_v40, %v817_v37  ;;  %v1764_v54 = vmul.f32 %v1670_v20, %v1374_v5  ;;  %v872_v61 = vsel %vm342_vm1, %v870_v57, %v871_v62  ;;  %v300_v55 = vadd.f32 %v265_v44, %v190_v38 }
  0x45   : > { %v555_v56 = vadd.f32 %v520_v13, %v462_v0  ;;  %v689_v48 = vunpack.c.h.bf16 %v1748_v30  ;;  %v525_v15 = vrot.slane %v1745_v29, 1  ;;  %v224_v18 = vmul.f32 %v1486_v9, %v1354_v2 }
  0x46   : > { %v946_v36 = vsel %vm921_vm2, %v910_v12, 0.0  ;;  %v318_v53 = vmul.f32 %v1486_v9, %v1364_v3  ;;  %v394_v33 = vadd.f32 %v359_v52, %v300_v55  ;;  %v187_v31 = vmul.f32 %v1486_v9, %v1349_v1 }
  0x47   : > { %947 = vadd.xlane.f32.xlu1 %v946_v36  ;;  %v648_v13 = vadd.f32 %v613_v24, %v555_v56  ;;  %v1781_v62 = vmul.f32 %v1385_v11, %v689_v48  ;;  %v1786_v45 = vmul.f32 %v1401_v17, %v689_v48  ;;  %v261_v41 = vrot.slane %v224_v18, 1 }
  0x48   : > { %v355_v38 = vrot.slane %v318_v53, 2  ;;  %v427_v37 = vunpack.c.l.bf16 %v1636_v46  ;;  %v467_v57 = vadd.f32 %v451_v8, %v394_v33  ;;  %v618_v0 = vrot.slane %v1764_v54, 2 }
  0x49   : > { %v721_v35 = vadd.f32 %v705_v50, %v648_v13  ;;  %v710_v24 = vmul.f32 %v1414_v23, %v689_v48  ;;  %v784_v12 = vrot.slane %v1781_v62, 1  ;;  %v263_v56 = vsel %vm248_vm0, %v261_v41, %v262_v49 }
  0x4a   : > { %v357_v9 = vsel %vm342_vm1, %v355_v38, %v356_v6  ;;  %v448_v55 = vmul.f32 %v1396_v16, %v427_v37  ;;  %v560_v46 = vadd.f32 %v525_v15, %v467_v57  ;;  %v297_v50 = vadd.f32 %v263_v56, %v187_v31  ;;  %v1817_v38 = vld [vmem:[%s1359_s22 + $0x54] sm:$0xff]   ;;  %v1283_v56 = vld [vmem:[%s1359_s22 + $0x60] sm:$0xff]  }
  0x4b   : > { %v814_v36 = vadd.f32 %v779_v51, %v721_v35  ;;  %v485_v8 = vmul.f32 %v1369_v4, %v427_v37  ;;  %v877_v48 = vrot.slane %v1786_v45, 2  ;;  %v578_v39 = vmul.f32 %v1374_v5, %v427_v37 }
  0x4c   : > { %v744_v34 = vmul.f32 %v1683_v28, %v1385_v11  ;;  %v837_v49 = vmul.f32 %v1683_v28, %v1401_v17  ;;  %v653_v51 = vadd.f32 %v618_v0, %v560_v46  ;;  %v391_v18 = vadd.f32 %v357_v9, %v297_v50 }
  0x4d   : > { %v907_v6 = vadd.f32 %v872_v61, %v814_v36  ;;  %v521_v53 = vrot.slane %v485_v8, 1  ;;  %v614_v13 = vrot.slane %v578_v39, 2  ;;  %v192_v31 = vmul.f32 %v1670_v20, %v1349_v1 }
  0x4e   : > { %v780_v33 = vrot.slane %v744_v34, 1  ;;  %v1814_v41 = vmul.f32 %v1670_v20, %v1354_v2  ;;  %v726_v35 = vadd.f32 %v710_v24, %v653_v51  ;;  %v464_v61 = vadd.f32 %v448_v55, %v391_v18 }
  0x4f   : > { %v937_v37 = vsel %vm917_vm3, %v907_v6, 0.0  ;;  %v523_v57 = vsel %vm248_vm0, %v521_v53, %v522_v7  ;;  %v616_v9 = vsel %vm342_vm1, %v614_v13, %v615_v42  ;;  %v707_v36 = vmul.f32 %v1683_v28, %v1414_v23 }
  0x50   : > { %938 = vadd.xlane.f32.xlu0 %v937_v37  ;;  %v873_v46 = vrot.slane %v837_v49, 2  ;;  %v268_v50 = vrot.slane %v1814_v41, 1  ;;  %v819_v24 = vadd.f32 %v784_v12, %v726_v35  ;;  %v557_v55 = vadd.f32 %v523_v57, %v464_v61 }
  0x51   : > { %v1834_v59 = vmul.f32 %v1670_v20, %v1364_v3  ;;  %v432_v7 = vunpack.c.h.bf16 %v1817_v38  ;;  %v782_v60 = vsel %vm248_vm0, %v780_v33, %v781_v43  ;;  %v1842_v8 = vunpack.c.h.bf16 %v1283_v56 }
  0x52   : > { %v302_v42 = vadd.f32 %v268_v50, %v192_v31  ;;  %v168_v39 = vunpack.c.l.bf16 %v1705_v19  ;;  %v912_v34 = vadd.f32 %v877_v48, %v819_v24  ;;  %v650_v49 = vadd.f32 %v616_v9, %v557_v55 }
  0x53   : > { %v362_v20 = vrot.slane %v1834_v59, 2  ;;  %v453_v6 = vmul.f32 %v1396_v16, %v432_v7  ;;  %v875_v58 = vsel %vm342_vm1, %v873_v46, %v874_v40  ;;  %v1853_v43 = vmul.f32 %v1369_v4, %v432_v7 }
  0x54   : > { %v1856_v51 = vmul.f32 %v1374_v5, %v432_v7  ;;  %v1860_v19 = vmul.f32 %v1842_v8, %v1385_v11  ;;  %v952_v18 = vsel %vm921_vm2, %v912_v34, 0.0  ;;  %v723_v53 = vadd.f32 %v707_v36, %v650_v49 }
  0x55   : > { %v396_v13 = vadd.f32 %v362_v20, %v302_v42  ;;  %v1865_v47 = vunpack.c.l.bf16 %v1283_v56  ;;  %953 = vadd.xlane.f32.xlu1 %v952_v18  ;;  %v528_v40 = vrot.slane %v1853_v43, 1  ;;  %v712_v31 = vmul.f32 %v1842_v8, %v1414_v23  ;;  %v144_v56 = vld [vmem:[%s1359_s22 + $0xc] ss:$24 sps:$4 sm:$0xff]  }
  0x56   : > { %v621_v33 = vrot.slane %v1856_v51, 2  ;;  %v1873_v37 = vmul.f32 %v1842_v8, %v1401_v17  ;;  %v816_v35 = vadd.f32 %v782_v60, %v723_v53  ;;  %v787_v57 = vrot.slane %v1860_v19, 1 }
  0x57   : > { %v469_v61 = vadd.f32 %v453_v6, %v396_v13  ;;  %v226_v9 = vmul.f32 %v1354_v2, %v168_v39  ;;  %v189_v36 = vmul.f32 %v1349_v1, %v168_v39  ;;  %v320_v46 = vmul.f32 %v1364_v3, %v168_v39 }
  0x58   : > { %v487_v24 = vmul.f32 %v1683_v28, %v1369_v4  ;;  %v580_v55 = vmul.f32 %v1683_v28, %v1374_v5  ;;  %v909_v7 = vadd.f32 %v875_v58, %v816_v35  ;;  %v688_v34 = vunpack.c.l.bf16 %v1748_v30 }
  0x59   : > { %v562_v60 = vadd.f32 %v528_v40, %v469_v61  ;;  %v264_v42 = vrot.slane %v226_v9, 1  ;;  %v880_v49 = vrot.slane %v1873_v37, 2  ;;  %v358_v6 = vrot.slane %v320_v46, 2 }
  0x5a   : > { %v524_v18 = vrot.slane %v487_v24, 1  ;;  %v160_v53 = vunpack.c.l.bf16 %v144_v56  ;;  %v943_v39 = vsel %vm917_vm3, %v909_v7, 0.0  ;;  %v450_v35 = vmul.f32 %v1683_v28, %v1396_v16 }
  0x5b   : > { %v655_v13 = vadd.f32 %v621_v33, %v562_v60  ;;  %v266_v58 = vsel %vm248_vm0, %v264_v42, %v265_v44  ;;  %944 = vadd.xlane.f32.xlu0 %v943_v39  ;;  %v360_v30 = vsel %vm342_vm1, %v358_v6, %v359_v52  ;;  %v617_v9 = vrot.slane %v580_v55, 2 }
  0x5c   : > { %v299_v61 = vadd.f32 %v266_v58, %v189_v36  ;;  %v709_v46 = vmul.f32 %v1414_v23, %v688_v34  ;;  %v526_v7 = vsel %vm248_vm0, %v524_v18, %v525_v15  ;;  %v746_v10 = vmul.f32 %v1385_v11, %v688_v34 }
  0x5d   : > { %v728_v24 = vadd.f32 %v712_v31, %v655_v13  ;;  %v839_v44 = vmul.f32 %v1401_v17, %v688_v34  ;;  %v181_v42 = vmul.f32 %v1349_v1, %v160_v53  ;;  %v218_v36 = vmul.f32 %v1354_v2, %v160_v53 }
  0x5e   : > { %v393_v60 = vadd.f32 %v360_v30, %v299_v61  ;;  %v312_v63 = vmul.f32 %v1364_v3, %v160_v53  ;;  %v783_v55 = vrot.slane %v746_v10, 1  ;;  %v479_v29 = vmul.f32 %v1391_v14, %v1369_v4 }
  0x5f   : > { %v821_v52 = vadd.f32 %v787_v57, %v728_v24  ;;  %v876_v31 = vrot.slane %v839_v44, 2  ;;  %v252_v6 = vrot.slane %v218_v36, 1  ;;  %v572_v34 = vmul.f32 %v1391_v14, %v1374_v5 }
  0x60   : > { %v466_v15 = vadd.f32 %v450_v35, %v393_v60  ;;  %v346_v18 = vrot.slane %v312_v63, 2  ;;  %v619_v53 = vsel %vm342_vm1, %v617_v9, %v618_v0  ;;  %v442_v13 = vmul.f32 %v1391_v14, %v1396_v16 }
  0x61   : > { %v914_v39 = vadd.f32 %v880_v49, %v821_v52  ;;  %v512_v58 = vrot.slane %v479_v29, 1  ;;  %v785_v35 = vsel %vm248_vm0, %v783_v55, %v784_v12  ;;  %v2085_v30 = vrot.slane %v1406_v21, 1 }
  0x62   : > { %v559_v61 = vadd.f32 %v526_v7, %v466_v15  ;;  %v2086_v10 = vrot.slane %v1409_v22, 2  ;;  %v605_v9 = vrot.slane %v572_v34, 2  ;;  %v680_v60 = vunpack.c.h.bf16 %v144_v56 }
  0x63   : > { %v254_v24 = vsel %vm248_vm0, %v252_v6, %v2085_v30  ;;  %v958_v54 = vsel %vm921_vm2, %v914_v39, 0.0  ;;  %v878_v62 = vsel %vm342_vm1, %v876_v31, %v877_v48  ;;  %v2087_v12 = vrot.slane %v1419_v25, 1 }
  0x64   : > { %v348_v44 = vsel %vm342_vm1, %v346_v18, %v2086_v10  ;;  %v291_v0 = vadd.f32 %v254_v24, %v181_v42  ;;  %959 = vadd.xlane.f32.xlu1 %v958_v54  ;;  %v652_v14 = vadd.f32 %v619_v53, %v559_v61  ;;  %v228_v22 = vmul.f32 %v1683_v28, %v1354_v2 }
  0x65   : > { %v514_v21 = vsel %vm248_vm0, %v512_v58, %v2087_v12  ;;  %v738_v36 = vmul.f32 %v1385_v11, %v680_v60  ;;  %v831_v42 = vmul.f32 %v1401_v17, %v680_v60  ;;  %v191_v56 = vmul.f32 %v1683_v28, %v1349_v1 }
  0x66   : > { %v385_v7 = vadd.f32 %v348_v44, %v291_v0  ;;  %v725_v63 = vadd.f32 %v709_v46, %v652_v14  ;;  %v267_v45 = vrot.slane %v228_v22, 1  ;;  %v322_v48 = vmul.f32 %v1683_v28, %v1364_v3 }
  0x67   : > { %v431_v25 = vunpack.c.l.bf16 %v1817_v38  ;;  %v2088_v55 = vrot.slane %v1422_v26, 2  ;;  %v701_v29 = vmul.f32 %v1414_v23, %v680_v60  ;;  %v771_v15 = vrot.slane %v738_v36, 1 }
  0x68   : > { %v458_v52 = vadd.f32 %v442_v13, %v385_v7  ;;  %v818_v6 = vadd.f32 %v785_v35, %v725_v63  ;;  %v864_v18 = vrot.slane %v831_v42, 2  ;;  %v269_v46 = vsel %vm248_vm0, %v267_v45, %v268_v50  ;;  %v157_v13 = vld [vmem:[%s1359_s22 + $0x54] sm:$0xff]  }
  0x69   : > { %v607_v31 = vsel %vm342_vm1, %v605_v9, %v2088_v55  ;;  %v361_v34 = vrot.slane %v322_v48, 2  ;;  %v2089_v28 = vrot.slane %v1425_v27, 1  ;;  %v301_v53 = vadd.f32 %v269_v46, %v191_v56  ;;  %v1217_v56 = vld [vmem:[%s1359_s22 + $0x6c] sm:$0xff]  }
  0x6a   : > { %v551_v39 = vadd.f32 %v514_v21, %v458_v52  ;;  %v452_v26 = vmul.f32 %v1396_v16, %v431_v25  ;;  %v911_v58 = vadd.f32 %v878_v62, %v818_v6  ;;  %v489_v35 = vmul.f32 %v1369_v4, %v431_v25 }
  0x6b   : > { %v773_v38 = vsel %vm248_vm0, %v771_v15, %v2089_v28  ;;  %v363_v61 = vsel %vm342_vm1, %v361_v34, %v362_v20  ;;  %v582_v41 = vmul.f32 %v1374_v5, %v431_v25  ;;  %v748_v27 = vmul.f32 %v1865_v47, %v1385_v11 }
  0x6c   : > { %v644_v50 = vadd.f32 %v607_v31, %v551_v39  ;;  %v395_v30 = vadd.f32 %v363_v61, %v301_v53  ;;  %v841_v24 = vmul.f32 %v1865_v47, %v1401_v17  ;;  %v949_v10 = vsel %vm917_vm3, %v911_v58, 0.0 }
  0x6d   : > { %v527_v44 = vrot.slane %v489_v35, 1  ;;  %v620_v54 = vrot.slane %v582_v41, 2  ;;  %v173_v59 = vunpack.c.h.bf16 %v157_v13  ;;  %950 = vadd.xlane.f32.xlu0 %v949_v10  ;;  %v2090_v0 = vrot.slane %v1433_v32, 2 }
  0x6e   : > { %v717_v20 = vadd.f32 %v701_v29, %v644_v50  ;;  %v468_v60 = vadd.f32 %v452_v26, %v395_v30  ;;  %v786_v14 = vrot.slane %v748_v27, 1  ;;  %v711_v32 = vmul.f32 %v1865_v47, %v1414_v23 }
  0x6f   : > { %v866_v9 = vsel %vm342_vm1, %v864_v18, %v2090_v0  ;;  %v529_v62 = vsel %vm248_vm0, %v527_v44, %v528_v40  ;;  %v622_v12 = vsel %vm342_vm1, %v620_v54, %v621_v33  ;;  %v194_v21 = vmul.f32 %v1349_v1, %v173_v59 }
  0x70   : > { %v231_v22 = vmul.f32 %v1354_v2, %v173_v59  ;;  %v810_v7 = vadd.f32 %v773_v38, %v717_v20  ;;  %v561_v36 = vadd.f32 %v529_v62, %v468_v60  ;;  %v879_v42 = vrot.slane %v841_v24, 2 }
  0x71   : > { %v788_v43 = vsel %vm248_vm0, %v786_v14, %v787_v57  ;;  %v325_v51 = vmul.f32 %v1364_v3, %v173_v59  ;;  %v492_v33 = vmul.f32 %v1842_v8, %v1369_v4  ;;  %v455_v48 = vmul.f32 %v1842_v8, %v1396_v16 }
  0x72   : > { %v271_v40 = vrot.slane %v231_v22, 1  ;;  %v903_v63 = vadd.f32 %v866_v9, %v810_v7  ;;  %v654_v45 = vadd.f32 %v622_v12, %v561_v36  ;;  %v585_v25 = vmul.f32 %v1842_v8, %v1374_v5 }
  0x73   : > { %v365_v55 = vrot.slane %v325_v51, 2  ;;  %v693_v31 = vunpack.c.h.bf16 %v1217_v56  ;;  %v172_v19 = vunpack.c.l.bf16 %v157_v13  ;;  %v881_v15 = vsel %vm342_vm1, %v879_v42, %v880_v49 }
  0x74   : > { %v304_v52 = vadd.f32 %v271_v40, %v194_v21  ;;  %v925_v57 = vsel %vm917_vm3, %v903_v63, 0.0  ;;  %v727_v29 = vadd.f32 %v711_v32, %v654_v45  ;;  %v531_v18 = vrot.slane %v492_v33, 1 }
  0x75   : > { %926 = vadd.xlane.f32.xlu1 %v925_v57  ;;  %v624_v34 = vrot.slane %v585_v25, 2  ;;  %v230_v39 = vmul.f32 %v1354_v2, %v172_v19  ;;  %v324_v8 = vmul.f32 %v1364_v3, %v172_v19  ;;  %v751_v38 = vmul.f32 %v1385_v11, %v693_v31 }
  0x76   : > { %v398_v6 = vadd.f32 %v365_v55, %v304_v52  ;;  %v820_v46 = vadd.f32 %v788_v43, %v727_v29  ;;  %v193_v53 = vmul.f32 %v1349_v1, %v172_v19  ;;  %v491_v26 = vmul.f32 %v1865_v47, %v1369_v4 }
  0x77   : > { %v270_v37 = vrot.slane %v230_v39, 1  ;;  %v364_v58 = vrot.slane %v324_v8, 2  ;;  %v584_v49 = vmul.f32 %v1865_v47, %v1374_v5  ;;  %v714_v35 = vmul.f32 %v1414_v23, %v693_v31 }
  0x78   : > { %v471_v28 = vadd.f32 %v455_v48, %v398_v6  ;;  %v913_v13 = vadd.f32 %v881_v15, %v820_v46  ;;  %v844_v2 = vmul.f32 %v1401_v17, %v693_v31  ;;  %v692_v3 = vunpack.c.l.bf16 %v1217_v56 }
  0x79   : > { %v272_v50 = vsel %vm248_vm0, %v270_v37, %v271_v40  ;;  %v366_v1 = vsel %vm342_vm1, %v364_v58, %v365_v55  ;;  %v530_v30 = vrot.slane %v491_v26, 1  ;;  %v790_v27 = vrot.slane %v751_v38, 1 }
  0x7a   : > { %v564_v61 = vadd.f32 %v531_v18, %v471_v28  ;;  %v955_v41 = vsel %vm917_vm3, %v913_v13, 0.0  ;;  %v303_v24 = vadd.f32 %v272_v50, %v193_v53  ;;  %v454_v5 = vmul.f32 %v1865_v47, %v1396_v16 }
  0x7b   : > { %956 = vadd.xlane.f32.xlu0 %v955_v41  ;;  %v623_v10 = vrot.slane %v584_v49, 2  ;;  %v750_v44 = vmul.f32 %v1385_v11, %v692_v3  ;;  %v883_v59 = vrot.slane %v844_v2, 2  ;;  %v532_v0 = vsel %vm248_vm0, %v530_v30, %v531_v18 }
  0x7c   : > { %v657_v4 = vadd.f32 %v624_v34, %v564_v61  ;;  %v397_v20 = vadd.f32 %v366_v1, %v303_v24  ;;  %v843_v9 = vmul.f32 %v1401_v17, %v692_v3  ;;  %v713_v7 = vmul.f32 %v1414_v23, %v692_v3 }
  0x7d   : > { %v625_v62 = vsel %vm342_vm1, %v623_v10, %v624_v34  ;;  %v789_v12 = vrot.slane %v750_v44, 1  ;;  %v1002_v25 = vlaneseq  ;;  %v969_v18 = vstv %s1285_s10 }
  0x7e   : > { %v730_v54 = vadd.f32 %v714_v35, %v657_v4  ;;  %v470_v14 = vadd.f32 %v454_v5, %v397_v20  ;;  %v882_v16 = vrot.slane %v843_v9, 2  ;;  %vm1079_vm5 = vcmask 1043459  }
  0x7f   : > { %v791_v36 = vsel %vm248_vm0, %v789_v12, %v790_v27  ;;  %v1003_v31 = vand.u32 127, %v1002_v25  ;;  %v1006_v29 = vshrl.u32 %v1002_v25, 7  ;;  %vm1081_vm6 = vcmask 1044484  }
  0x80   : > { %v823_v60 = vadd.f32 %v790_v27, %v730_v54  ;;  %v563_v22 = vadd.f32 %v532_v0, %v470_v14  ;;  %v884_v42 = vsel %vm342_vm1, %v882_v16, %v883_v59  ;;  %vm1083_vm7 = vcmask 1045509  }
  0x81   : > { %v1004_v57 = vadd.s32 2, %v1003_v31  ;;  %v1009_v15 = vadd.s32 4294967290, %v1003_v31  ;;  %vm1085_vm8 = vcmask 1046534   ;;  %vm1087_vm9 = vcmask 1047559  }
  0x82   : > { %v916_v21 = vadd.f32 %v883_v59, %v823_v60  ;;  %v656_v11 = vadd.f32 %v625_v62, %v563_v22  ;;  %vm1094_vm10 = vcmask 97282   ;;  %vm1089_vm11 = vcmask 1041409  }
  0x83   : > { %v2020_v46 = vsub.s32 %v1004_v57, %v1006_v29  ;;  %v2022_v39 = vsub.s32 %v1009_v15, %v1006_v29  ;;  %vm1096_vm12 = vcmask 91136   ;;  %vm1104_vm13 = vcmask (!%p1221_p3), 97280  }
  0x84   : > { %v964_v47 = vsel %vm921_vm2, %v916_v21, 0.0  ;;  %v729_v32 = vadd.f32 %v713_v7, %v656_v11 }
  0x85   : > { %965 = vadd.xlane.f32.xlu1 %v964_v47 }
  0x86   : > { %v822_v17 = vadd.f32 %v791_v36, %v729_v32 }
  0x88   : > { %v915_v56 = vadd.f32 %v884_v42, %v822_v17 }
  0x8a   : > { %v961_v43 = vsel %vm917_vm3, %v915_v56, 0.0 }
  0x8b   : > { %962 = vadd.xlane.f32.xlu0 %v961_v43 }
  0xaf   : > { %v930_v40 = vpop.xlane.xlu1 %929 }
  0xb0   : > { %v973_v8 = vadd.f32 %v969_v18, %v930_v40 }
  0xb2   : > { %v924_v51 = vpop.xlane.xlu0 %923  ;;  %v1023_v3 = vrot.slane %v973_v8, %v2022_v39 }
  0xb3   : > { %v971_v53 = vadd.f32 %v969_v18, %v924_v51 }
  0xb5   : > { %v1013_v1 = vrot.slane %v971_v53, %v2022_v39 }
  0xb7   : > { %v936_v33 = vpop.xlane.xlu1 %935 }
  0xb8   : > { %v975_v13 = vadd.f32 %v969_v18, %v936_v33 }
  0xba   : > { %v1032_v24 = vrot.slane %v975_v13, %v2022_v39 }
  0xbd   : > { %v920_v63 = vpop.xlane.xlu0 %919 }
  0xbe   : > { %v970_v34 = vadd.f32 %v969_v18, %v920_v63 }
  0xc0   : > { %v1008_v49 = vrot.slane %v970_v34, %v2020_v46 }
  0xc2   : > { %v1015_v10 = vsel %vm1014_vm4, %v1013_v1, %v1008_v49 }
  0xc7   : > { %v942_v23 = vpop.xlane.xlu1 %941 }
  0xc8   : > { %v977_v61 = vadd.f32 %v969_v18, %v942_v23 }
  0xca   : > { %v1041_v44 = vrot.slane %v977_v61, %v2022_v39 }
  0xcd   : > { %v933_v45 = vpop.xlane.xlu0 %932 }
  0xce   : > { %v974_v28 = vadd.f32 %v969_v18, %v933_v45 }
  0xd0   : > { %v1028_v41 = vrot.slane %v974_v28, %v2020_v46 }
  0xd2   : > { %v1033_v20 = vsel %vm1014_vm4, %v1032_v24, %v1028_v41 }
  0xd4   : > { %v948_v48 = vpop.xlane.xlu1 %947 }
  0xd5   : > { %v979_v50 = vadd.f32 %v969_v18, %v948_v48 }
  0xd7   : > { %v1050_v0 = vrot.slane %v979_v50, %v2022_v39 }
  0xdd   : > { %v939_v52 = vpop.xlane.xlu0 %938 }
  0xde   : > { %v976_v26 = vadd.f32 %v969_v18, %v939_v52 }
  0xe0   : > { %v1037_v30 = vrot.slane %v976_v26, %v2020_v46 }
  0xe2   : > { %v954_v55 = vpop.xlane.xlu1 %953  ;;  %v1042_v60 = vsel %vm1014_vm4, %v1041_v44, %v1037_v30 }
  0xe3   : > { %v981_v4 = vadd.f32 %v969_v18, %v954_v55 }
  0xe5   : > { %v1059_v14 = vrot.slane %v981_v4, %v2022_v39 }
  0xe8   : > { %v945_v19 = vpop.xlane.xlu0 %944 }
  0xe9   : > { %v978_v37 = vadd.f32 %v969_v18, %v945_v19 }
  0xeb   : > { %v1046_v5 = vrot.slane %v978_v37, %v2020_v46 }
  0xed   : > { %v1051_v12 = vsel %vm1014_vm4, %v1050_v0, %v1046_v5 }
  0xf1   : > { %v960_v6 = vpop.xlane.xlu1 %959 }
  0xf2   : > { %v983_v42 = vadd.f32 %v969_v18, %v960_v6 }
  0xf4   : > { %v1068_v51 = vrot.slane %v983_v42, %v2022_v39 }
  0xfa   : > { %v951_v38 = vpop.xlane.xlu0 %950 }
  0xfb   : > { %v980_v35 = vadd.f32 %v969_v18, %v951_v38 }
  0xfd   : > { %v1055_v54 = vrot.slane %v980_v35, %v2020_v46 }
  0xff   : > { %v1060_v22 = vsel %vm1014_vm4, %v1059_v14, %v1055_v54 }
 0x102   : > { %v927_v58 = vpop.xlane.xlu1 %926 }
 0x103   : > { %v972_v2 = vadd.f32 %v969_v18, %v927_v58 }
 0x105   : > { %v1019_v27 = vrot.slane %v972_v2, %v2020_v46 }
 0x107   : > { %v1024_v59 = vsel %vm1014_vm4, %v1023_v3, %v1019_v27 }
 0x108   : > { %v1080_v9 = vsel %vm1079_vm5, %v1024_v59, %v1015_v10  ;;  %v957_v47 = vpop.xlane.xlu0 %956 }
 0x109   : > { %v1082_v62 = vsel %vm1081_vm6, %v1033_v20, %v1080_v9  ;;  %v982_v36 = vadd.f32 %v969_v18, %v957_v47 }
 0x10a   : > { %v1084_v21 = vsel %vm1083_vm7, %v1042_v60, %v1082_v62 }
 0x10b   : > { %v1086_v7 = vsel %vm1085_vm8, %v1051_v12, %v1084_v21  ;;  %v1064_v56 = vrot.slane %v982_v36, %v2020_v46 }
 0x10c   : > { %v1088_v16 = vsel %vm1087_vm9, %v1060_v22, %v1086_v7 }
 0x10d   : > { %1095 = vst.msk [vmem:[%s1093_s16 - $0x2] sm:$0xfc] %vm1094_vm10, %v1088_v16  ;;  %v1069_v63 = vsel %vm1014_vm4, %v1068_v51, %v1064_v56 }
 0x112   : > { %v966_v11 = vpop.xlane.xlu1 %965 }
 0x113   : > { %v985_v32 = vadd.f32 %v969_v18, %v966_v11 }
 0x115   : > { %v1077_v43 = vrot.slane %v985_v32, %v2022_v39 }
 0x118   : > { %v963_v17 = vpop.xlane.xlu0 %962 }
 0x119   : > { %v984_v40 = vadd.f32 %v969_v18, %v963_v17  ;;  %1101 = sbr.rel (%p1221_p3) target bundleno = 741 (0x2e5), region = 36 }
 0x11b   : > { %v1073_v33 = vrot.slane %v984_v40, %v2020_v46 }
 0x11d   : > { %v1078_v23 = vsel %vm1014_vm4, %v1077_v43, %v1073_v33 }
 0x11e   : > { %v1090_v45 = vsel %vm1089_vm11, %v1078_v23, %v1069_v63 }
 0x11f   : > { %1097 = vst.msk [vmem:[%s1093_s16 + $0x6] sm:$0x3] %vm1096_vm12, %v1090_v45 }
 0x126   : > { %v1102_v48 = vld [vmem:[%s2078_s3] sm:$0xff]  ;;  %v1103_v25 = vld [vmem:[%s2078_s3 + $0x8] sm:$0xff] }
 0x127   : > { %v1105_v52 = vsel %vm1104_vm13, %v1102_v48, -inf  ;;  %v1106_v55 = vsel %vm1104_vm13, %v1103_v25, -inf }
 0x128   : > { %v1107_v31 = vmax.f32 %v1105_v52, %v1106_v55 }
 0x12a   : > { %1108 = vmax.xlane.f32.xlu0 %v1107_v31 }
 0x1b7   : > { %v1109_v19 = vpop.xlane.xlu0 %1108 }
 0x1b8   : > { %v1110_v57 = vrot.slane %v1109_v19, 4 }
 0x1ba   : > { %v1111_v29 = vmax.f32 %v1109_v19, %v1110_v57 }
 0x1bc   : > { %v1112_v15 = vrot.slane %v1111_v29, 2 }
 0x1be   : > { %v1113_v6 = vmax.f32 %v1111_v29, %v1112_v15 }
 0x1c0   : > { %v1114_v18 = vrot.slane %v1113_v6, 1 }
 0x1c2   : > { %v1115_v46 = vmax.f32 %v1113_v6, %v1114_v18 }
 0x1c4   : > { %1286 = vpush %v1115_v46 }
 0x1f5   : > { %s1287_s15 = spop %1286 }
 0x1f6   : > { %v1117_v34 = vstv %s1287_s15 }
 0x1f7   : > { %v1118_v39 = vsub.f32 %v1102_v48, %v1117_v34  ;;  %v1119_v8 = vsub.f32 %v1103_v25, %v1117_v34 }
 0x1f9   : > { %v1120_v28 = vmul.f32 1.442695, %v1118_v39  ;;  %v1122_v38 = vmul.f32 1.442695, %v1119_v8 }
 0x1fb   : > { %1298 = vpow2.f32 %v1120_v28 }
 0x1fc   : > { %1300 = vpow2.f32 %v1122_v38 }
 0x205   : > { %v1299_v53 = vpop.eup %1298 }
 0x206   : > { %v1301_v26 = vpop.eup %1300  ;;  %v1124_v13 = vsel %vm1104_vm13, %v1299_v53, 0.0 }
 0x207   : > { %v1125_v37 = vsel %vm1104_vm13, %v1301_v26, 0.0 }
 0x208   : > { %v1126_v58 = vadd.f32 %v1125_v37, %v1124_v13 }
 0x20a   : > { %1127 = vadd.xlane.f32.xlu0 %v1126_v58 }
 0x297   : > { %v1128_v49 = vpop.xlane.xlu0 %1127 }
 0x298   : > { %v1129_v61 = vrot.slane %v1128_v49, 4 }
 0x29a   : > { %v1130_v35 = vadd.f32 %v1129_v61, %v1128_v49 }
 0x29c   : > { %v1131_v2 = vrot.slane %v1130_v35, 2 }
 0x29e   : > { %v1132_v3 = vadd.f32 %v1131_v2, %v1130_v35 }
 0x2a0   : > { %v1133_v41 = vrot.slane %v1132_v3, 1 }
 0x2a2   : > { %v1134_v50 = vadd.f32 %v1133_v41, %v1132_v3 }
 0x2a4   : > { %1288 = vpush %v1134_v50 }
 0x2d5   : > { %s1289_s20 = spop %1288 }
 0x2d6   : > { %v1136_v1 = vstv %s1289_s20 }
 0x2d7   : > { %1302 = vrcp.f32 %v1136_v1 }
 0x2e1   : > { %v1303_v30 = vpop.eup %1302 }
 0x2e2   : > { %v1138_v4 = vmul.f32 %v1303_v30, %v1299_v53  ;;  %v1139_v27 = vmul.f32 %v1303_v30, %v1301_v26 }
 0x2e4   : > { %1140 = vst.msk [vmem:[%s2078_s3] sm:$0xff] %vm1104_vm13, %v1138_v4  ;;  %1141 = vst.msk [vmem:[%s2078_s3 + $0x8] sm:$0xff] %vm1104_vm13, %v1139_v27 }
 0x2e5 PF: > { %s15_s14 = sadd.s32 1, %s1310_s14  }
 0x2e6   : > { %p12_p4 = scmp.ge.s32.totalorder %s15_s14, 4  }
 0x2e8   :  { %14 = sbr.rel (!%p12_p4) target bundleno = 3 (0x3), region = 63 }

</bundles_post_ra>
